<compile_context>
chip_gen: v6e
topology: v6e:2x2x1
jax: 0.10.0
libtpu: 0.0.40
codegen_flags: <defaults>
</compile_context>

<pallas_src>
import functools

import numpy as np
import jax
import jax.numpy as jnp
from jax import lax
from jax.experimental import pallas as pl
from jax.experimental.pallas import tpu as pltpu

EPS = 1e-5  # PyTorch InstanceNorm2d default eps


def _round_up(x, m):
    return ((x + m - 1) // m) * m


def _resblock_kernel(x_ref, w_ref, out_ref, buf_ref, p_ref, *, W, K, M):
    # x_ref  : (NB, Cp, HW)            input batch block, flattened spatial on lanes
    # w_ref  : (S, Cp, K*K*Cp)         conv weights (tap-major columns), matmul dtype
    # out_ref: (NB, Cp, HW)
    # buf_ref: (NB, Cp, HW + 2*M) f32  per-image activations + zero halo margins (lane axis)
    # p_ref  : (K*K*Cp, NB*HW)         im2col patch matrix, batch folded into lanes
    NB, Cp, HW = out_ref.shape
    S = w_ref.shape[0]
    pad = K // 2
    p_dtype = p_ref.dtype

    # Horizontal-tap validity masks, materialized once at full (Cp, HW) and reused by
    # every tap / stage / image (no broadcast_in_dim inside the hot loops).
    col = lax.broadcasted_iota(jnp.int32, (Cp, HW), 1) % W
    masks = {}
    for dw in range(-pad, pad + 1):
        if dw != 0:
            masks[dw] = jnp.logical_and(col + dw >= 0, col + dw < W).astype(jnp.float32)

    # Zero the halo margins once per grid step; only the centre is (re)written below.
    for b in range(NB):
        buf_ref[b, :, :M] = jnp.zeros((Cp, M), jnp.float32)
        buf_ref[b, :, M + HW:] = jnp.zeros((Cp, M), jnp.float32)
        buf_ref[b, :, M:M + HW] = x_ref[b].astype(jnp.float32)

    for s in range(S):                               # static unroll over stages
        # im2col gather: K*K taps x NB images; every store is a full-sublane-tile,
        # 128-lane-aligned strip of p_ref.
        for kh in range(K):
            for kw in range(K):
                dh, dw = kh - pad, kw - pad
                d = dh * W + dw
                t = kh * K + kw
                for b in range(NB):
                    piece = buf_ref[b, :, M + d:M + d + HW]     # (Cp, HW) lane-offset load
                    if dw != 0:
                        piece = piece * masks[dw]               # kill horizontal row-wrap
                    p_ref[t * Cp:(t + 1) * Cp, b * HW:(b + 1) * HW] = piece.astype(p_dtype)

        # ONE fused conv matmul per stage for the whole batch block:
        # (Cp, K*K*Cp) @ (K*K*Cp, NB*HW) -> (Cp, NB*HW), f32 accumulation.
        # (Conv bias omitted: InstanceNorm2d(affine=False) cancels it exactly.)
        y = jnp.dot(w_ref[s], p_ref[...], preferred_element_type=jnp.float32)

        # InstanceNorm2d per image (biased variance, eps=1e-5) over 128-aligned lane
        # segments, ReLU between stages only; residual add fused into the last stage.
        for b in range(NB):
            yb = y[:, b * HW:(b + 1) * HW]
            mean = jnp.mean(yb, axis=1, keepdims=True)
            var = jnp.mean((yb - mean) ** 2, axis=1, keepdims=True)
            yb = (yb - mean) * lax.rsqrt(var + EPS)
            if s != S - 1:
                buf_ref[b, :, M:M + HW] = jnp.maximum(yb, 0.0)      # feed the next stage
            else:
                out_ref[b] = (yb + x_ref[b].astype(jnp.float32)).astype(out_ref.dtype)


def _device_kind():
    try:
        return jax.devices()[0].device_kind.lower().replace(" ", "")
    except Exception:
        return ""


def _operand_config():
    """(matmul operand dtype, channel sublane tile) per TPU generation."""
    kind = _device_kind()
    if any(tag in kind for tag in ("v5e", "v5lite")):
        return jnp.float32, 8        # v5e: keep operands f32; (8,128) f32 tiles everywhere
    return jnp.bfloat16, 16          # v6e / v7x / other: bf16 MXU operands, (16,128) bf16 tiles


def _default_batch_block(N):
    """Whole batch in one grid step on single-TC chips; split across cores otherwise."""
    kind = _device_kind()
    if any(tag in kind for tag in ("v5e", "v5lite", "v6e", "v6lite")):
        return N                     # single TensorCore: fold batch, avoid grid-step overhead
    nb = max(1, N // 2)              # v7x (2 TCs) / unknown: at least 2 "parallel" grid steps
    while N % nb:                    # largest divisor of N not exceeding N//2
        nb -= 1
    return nb


def residual_conv_block(x_nchw, weights_oihw, biases=None, kernel_size=3, batch_block=None):
    """Fused ResidualConvBlock forward.

    x_nchw: (N, C, H, W); weights_oihw: (S, Cout, Cin, K, K); biases: (S, Cout) or None.
    `biases` is accepted for API fidelity but unused: InstanceNorm2d(affine=False) follows
    every conv and cancels a per-channel constant bias exactly.
    """
    del biases
    S, Cout, Cin, K, K2 = weights_oihw.shape
    assert K == K2 == kernel_size
    assert K % 2 == 1, "'same' padding here assumes an odd kernel size"
    N, C, H, W = x_nchw.shape
    assert C == Cin == Cout, "residual add requires in_channels == out_channels"
    pad = K // 2
    HW = H * W
    # Lane margin >= max |tap shift| = pad*(W+1), rounded to 128 so the centre stays aligned.
    M = _round_up(pad * (W + 1), 128)

    mm_dtype, c_tile = _operand_config()
    Cp = _round_up(C, c_tile)        # channel pad -> every strip is a full sublane tile

    x_flat = x_nchw.reshape(N, C, HW)                        # free reshape: NCHW -> (N,C,HW)
    if Cp != C:
        x_flat = jnp.pad(x_flat, ((0, 0), (0, Cp - C), (0, 0)))

    # Weights: (S, Cp, K*K*Cp) with tap-major (kh, kw, ci) columns; zero rows/cols for the
    # padded channels; no bias column (cancelled by InstanceNorm, see above).
    w_pad = jnp.zeros((S, Cp, Cp, K, K), jnp.float32).at[:, :C, :C].set(
        weights_oihw.astype(jnp.float32))
    w_flat = jnp.transpose(w_pad, (0, 1, 3, 4, 2)).reshape(S, Cp, K * K * Cp).astype(mm_dtype)

    if batch_block is None:
        batch_block = _default_batch_block(N)
    NB = batch_block
    assert N % NB == 0

    kernel = functools.partial(_resblock_kernel, W=W, K=K, M=M)

    out_flat = pl.pallas_call(
        kernel,
        out_shape=jax.ShapeDtypeStruct((N, Cp, HW), x_nchw.dtype),
        grid_spec=pltpu.PrefetchScalarGridSpec(
            num_scalar_prefetch=0,
            grid=(N // NB,),
            in_specs=[
                pl.BlockSpec((NB, Cp, HW), lambda n: (n, 0, 0)),
                pl.BlockSpec((S, Cp, K * K * Cp), lambda n: (0, 0, 0)),
            ],
            out_specs=pl.BlockSpec((NB, Cp, HW), lambda n: (n, 0, 0)),
            scratch_shapes=[
                pltpu.VMEM((NB, Cp, HW + 2 * M), jnp.float32),   # halo-padded activations
                pltpu.VMEM((K * K * Cp, NB * HW), mm_dtype),     # im2col (batch in lanes)
            ],
        ),
        compiler_params=pltpu.CompilerParams(dimension_semantics=("parallel",)),
    )(x_flat, w_flat)

    return out_flat[:, :C, :].reshape(N, C, H, W)


def reference_nchw(x, weights_oihw, biases):
    """Pure-JAX reference matching the PyTorch forward (NCHW, with conv bias)."""
    S = weights_oihw.shape[0]
    res = x
    y = x
    for s in range(S):
        y = lax.conv_general_dilated(
            y, weights_oihw[s], window_strides=(1, 1), padding="SAME",
            dimension_numbers=("NCHW", "OIHW", "NCHW"))
        y = y + biases[s].reshape(1, -1, 1, 1)
        mean = jnp.mean(y, axis=(2, 3), keepdims=True)
        var = jnp.mean((y - mean) ** 2, axis=(2, 3), keepdims=True)
        y = (y - mean) / jnp.sqrt(var + EPS)
        if s != S - 1:
            y = jnp.maximum(y, 0.0)
    return y + res


if __name__ == "__main__":
    # module config: ResidualConvBlock(n_stages=2, 4, 4, kernel_size=3, padding='same',
    #                                  normalization='instancenorm')
    n_stages, C, K = 2, 4, 3
    N, H, W = 2, 16, 16

    key = jax.random.PRNGKey(0)
    kx, kw, kb = jax.random.split(key, 3)
    x = jax.random.normal(kx, (N, C, H, W), dtype=jnp.float32)
    # PyTorch Conv2d weight shapes: (Cout, Cin, K, K) per stage; biases are passed but are
    # mathematically cancelled by InstanceNorm2d(affine=False) right after each conv.
    weights = jax.random.normal(kw, (n_stages, C, C, K, K), dtype=jnp.float32) * 0.1
    biases = jax.random.normal(kb, (n_stages, C), dtype=jnp.float32) * 0.01

    out = jax.block_until_ready(residual_conv_block(x, weights, biases, kernel_size=K))
    ref = jax.block_until_ready(reference_nchw(x, weights, biases))

    mm_dtype, _ = _operand_config()
    tol = 5e-2 if mm_dtype == jnp.bfloat16 else 1e-4   # bf16 MXU operands on v6e/v7x
    np.testing.assert_allclose(np.asarray(out), np.asarray(ref), rtol=tol, atol=tol)
    print("KERNEL_OK")
</pallas_src>

<mosaic_0001>
module attributes {stable_mosaic.version = 11 : i64} {
  func.func @_resblock_kernel(%arg0: i32, %arg1: memref<1x16x256xf32, #tpu.memory_space<vmem>>, %arg2: memref<2x16x144xbf16, #tpu.memory_space<vmem>>, %arg3: memref<1x16x256xf32, #tpu.memory_space<vmem>>, %arg4: memref<1x16x512xf32, #tpu.memory_space<vmem>>, %arg5: memref<144x256xbf16, #tpu.memory_space<vmem>>) attributes {dimension_semantics = [#tpu.dimension_semantics<parallel>], iteration_bounds = array<i64: 2>, scalar_prefetch = 0 : i64, scratch_operands = 2 : i64, tpu.core_type = #tpu.core_type<tc>, window_params = [{transform_indices = @transform_0, window_bounds = array<i64: 1, 16, 256>}, {pipeline_mode = #tpu.pipeline_mode<synchronous>, transform_indices = @transform_1, window_bounds = array<i64: 2, 16, 144>}, {transform_indices = @transform_2, window_bounds = array<i64: 1, 16, 256>}]} {
    %0 = tpu.iota {dimensions = array<i32: 1>} : vector<16x256xi32>
    %c16_i32 = arith.constant 16 : i32
    %c0_i32 = arith.constant 0 : i32
    %1 = arith.cmpi eq, %c16_i32, %c0_i32 : i32
    %c1_i32 = arith.constant 1 : i32
    %2 = arith.select %1, %c1_i32, %c16_i32 : i32
    %3 = vector.broadcast %2 : i32 to vector<16x256xi32>
    %4 = arith.remsi %0, %3 : vector<16x256xi32>
    %c0_i32_0 = arith.constant 0 : i32
    %5 = vector.broadcast %c0_i32_0 : i32 to vector<16x256xi32>
    %6 = arith.cmpi ne, %4, %5 : vector<16x256xi32>
    %c0_i32_1 = arith.constant 0 : i32
    %7 = vector.broadcast %c0_i32_1 : i32 to vector<16x256xi32>
    %8 = arith.cmpi slt, %4, %7 : vector<16x256xi32>
    %c0_i32_2 = arith.constant 0 : i32
    %9 = arith.cmpi slt, %2, %c0_i32_2 : i32
    %10 = vector.broadcast %9 : i1 to vector<16x256xi1>
    %11 = vector.broadcast %10 : vector<16x256xi1> to vector<16x256xi1>
    %12 = arith.xori %8, %11 : vector<16x256xi1>
    %13 = arith.andi %12, %6 : vector<16x256xi1>
    %14 = vector.broadcast %2 : i32 to vector<16x256xi32>
    %15 = arith.addi %4, %14 : vector<16x256xi32>
    %16 = arith.select %13, %15, %4 : vector<16x256xi1>, vector<16x256xi32>
    %c-1_i32 = arith.constant -1 : i32
    %17 = vector.broadcast %c-1_i32 : i32 to vector<16x256xi32>
    %18 = arith.addi %16, %17 : vector<16x256xi32>
    %c0_i32_3 = arith.constant 0 : i32
    %19 = vector.broadcast %c0_i32_3 : i32 to vector<16x256xi32>
    %20 = arith.cmpi sge, %18, %19 : vector<16x256xi32>
    %c-1_i32_4 = arith.constant -1 : i32
    %21 = vector.broadcast %c-1_i32_4 : i32 to vector<16x256xi32>
    %22 = arith.addi %16, %21 : vector<16x256xi32>
    %c16_i32_5 = arith.constant 16 : i32
    %23 = vector.broadcast %c16_i32_5 : i32 to vector<16x256xi32>
    %24 = arith.cmpi slt, %22, %23 : vector<16x256xi32>
    %25 = arith.andi %20, %24 : vector<16x256xi1>
    %26 = arith.extui %25 : vector<16x256xi1> to vector<16x256xi32>
    %27 = arith.sitofp %26 : vector<16x256xi32> to vector<16x256xf32>
    %c1_i32_6 = arith.constant 1 : i32
    %28 = vector.broadcast %c1_i32_6 : i32 to vector<16x256xi32>
    %29 = arith.addi %16, %28 : vector<16x256xi32>
    %c0_i32_7 = arith.constant 0 : i32
    %30 = vector.broadcast %c0_i32_7 : i32 to vector<16x256xi32>
    %31 = arith.cmpi sge, %29, %30 : vector<16x256xi32>
    %c1_i32_8 = arith.constant 1 : i32
    %32 = vector.broadcast %c1_i32_8 : i32 to vector<16x256xi32>
    %33 = arith.addi %16, %32 : vector<16x256xi32>
    %c16_i32_9 = arith.constant 16 : i32
    %34 = vector.broadcast %c16_i32_9 : i32 to vector<16x256xi32>
    %35 = arith.cmpi slt, %33, %34 : vector<16x256xi32>
    %36 = arith.andi %31, %35 : vector<16x256xi1>
    %37 = arith.extui %36 : vector<16x256xi1> to vector<16x256xi32>
    %38 = arith.sitofp %37 : vector<16x256xi32> to vector<16x256xf32>
    %cst = arith.constant 0.000000e+00 : f32
    %39 = vector.broadcast %cst : f32 to vector<16x128xf32>
    %c0 = arith.constant 0 : index
    %c0_10 = arith.constant 0 : index
    %c0_11 = arith.constant 0 : index
    %40 = vector.load %arg4[%c0, %c0_10, %c0_11] : memref<1x16x512xf32, #tpu.memory_space<vmem>>, vector<1x16x128xf32>
    %41 = vector.shape_cast %40 : vector<1x16x128xf32> to vector<16x128xf32>
    %42 = vector.shape_cast %39 : vector<16x128xf32> to vector<1x16x128xf32>
    tpu.vector_store %arg4[%c0, %c0_10, %c0_11], %42 {strides = array<i32>} : memref<1x16x512xf32, #tpu.memory_space<vmem>>, vector<1x16x128xf32>,
    %cst_12 = arith.constant 0.000000e+00 : f32
    %43 = vector.broadcast %cst_12 : f32 to vector<16x128xf32>
    %c0_13 = arith.constant 0 : index
    %c0_14 = arith.constant 0 : index
    %c384 = arith.constant 384 : index
    %44 = vector.load %arg4[%c0_13, %c0_14, %c384] : memref<1x16x512xf32, #tpu.memory_space<vmem>>, vector<1x16x128xf32>
    %45 = vector.shape_cast %44 : vector<1x16x128xf32> to vector<16x128xf32>
    %46 = vector.shape_cast %43 : vector<16x128xf32> to vector<1x16x128xf32>
    tpu.vector_store %arg4[%c0_13, %c0_14, %c384], %46 {strides = array<i32>} : memref<1x16x512xf32, #tpu.memory_space<vmem>>, vector<1x16x128xf32>,
    %c0_15 = arith.constant 0 : index
    %c0_16 = arith.constant 0 : index
    %c0_17 = arith.constant 0 : index
    %47 = vector.load %arg1[%c0_15, %c0_16, %c0_17] : memref<1x16x256xf32, #tpu.memory_space<vmem>>, vector<1x16x256xf32>
    %48 = vector.shape_cast %47 : vector<1x16x256xf32> to vector<16x256xf32>
    %c0_18 = arith.constant 0 : index
    %c0_19 = arith.constant 0 : index
    %c128 = arith.constant 128 : index
    %49 = vector.load %arg4[%c0_18, %c0_19, %c128] : memref<1x16x512xf32, #tpu.memory_space<vmem>>, vector<1x16x256xf32>
    %50 = vector.shape_cast %49 : vector<1x16x256xf32> to vector<16x256xf32>
    %51 = vector.shape_cast %48 : vector<16x256xf32> to vector<1x16x256xf32>
    tpu.vector_store %arg4[%c0_18, %c0_19, %c128], %51 {strides = array<i32>} : memref<1x16x512xf32, #tpu.memory_space<vmem>>, vector<1x16x256xf32>,
    %c0_20 = arith.constant 0 : index
    %c0_21 = arith.constant 0 : index
    %c111 = arith.constant 111 : index
    %52 = vector.load %arg4[%c0_20, %c0_21, %c111] : memref<1x16x512xf32, #tpu.memory_space<vmem>>, vector<1x16x256xf32>
    %53 = vector.shape_cast %52 : vector<1x16x256xf32> to vector<16x256xf32>
    %54 = arith.mulf %53, %27 : vector<16x256xf32>
    %55 = arith.truncf %54 : vector<16x256xf32> to vector<16x256xbf16>
    %c0_22 = arith.constant 0 : index
    %c0_23 = arith.constant 0 : index
    %56 = vector.load %arg5[%c0_22, %c0_23] : memref<144x256xbf16, #tpu.memory_space<vmem>>, vector<16x256xbf16>
    tpu.vector_store %arg5[%c0_22, %c0_23], %55 {strides = array<i32>} : memref<144x256xbf16, #tpu.memory_space<vmem>>, vector<16x256xbf16>,
    %c0_24 = arith.constant 0 : index
    %c0_25 = arith.constant 0 : index
    %c112 = arith.constant 112 : index
    %57 = vector.load %arg4[%c0_24, %c0_25, %c112] : memref<1x16x512xf32, #tpu.memory_space<vmem>>, vector<1x16x256xf32>
    %58 = vector.shape_cast %57 : vector<1x16x256xf32> to vector<16x256xf32>
    %59 = arith.truncf %58 : vector<16x256xf32> to vector<16x256xbf16>
    %c16 = arith.constant 16 : index
    %c0_26 = arith.constant 0 : index
    %60 = vector.load %arg5[%c16, %c0_26] : memref<144x256xbf16, #tpu.memory_space<vmem>>, vector<16x256xbf16>
    tpu.vector_store %arg5[%c16, %c0_26], %59 {strides = array<i32>} : memref<144x256xbf16, #tpu.memory_space<vmem>>, vector<16x256xbf16>,
    %c0_27 = arith.constant 0 : index
    %c0_28 = arith.constant 0 : index
    %c113 = arith.constant 113 : index
    %61 = vector.load %arg4[%c0_27, %c0_28, %c113] : memref<1x16x512xf32, #tpu.memory_space<vmem>>, vector<1x16x256xf32>
    %62 = vector.shape_cast %61 : vector<1x16x256xf32> to vector<16x256xf32>
    %63 = arith.mulf %62, %38 : vector<16x256xf32>
    %64 = arith.truncf %63 : vector<16x256xf32> to vector<16x256xbf16>
    %c32 = arith.constant 32 : index
    %c0_29 = arith.constant 0 : index
    %65 = vector.load %arg5[%c32, %c0_29] : memref<144x256xbf16, #tpu.memory_space<vmem>>, vector<16x256xbf16>
    tpu.vector_store %arg5[%c32, %c0_29], %64 {strides = array<i32>} : memref<144x256xbf16, #tpu.memory_space<vmem>>, vector<16x256xbf16>,
    %c0_30 = arith.constant 0 : index
    %c0_31 = arith.constant 0 : index
    %c127 = arith.constant 127 : index
    %66 = vector.load %arg4[%c0_30, %c0_31, %c127] : memref<1x16x512xf32, #tpu.memory_space<vmem>>, vector<1x16x256xf32>
    %67 = vector.shape_cast %66 : vector<1x16x256xf32> to vector<16x256xf32>
    %68 = arith.mulf %67, %27 : vector<16x256xf32>
    %69 = arith.truncf %68 : vector<16x256xf32> to vector<16x256xbf16>
    %c48 = arith.constant 48 : index
    %c0_32 = arith.constant 0 : index
    %70 = vector.load %arg5[%c48, %c0_32] : memref<144x256xbf16, #tpu.memory_space<vmem>>, vector<16x256xbf16>
    tpu.vector_store %arg5[%c48, %c0_32], %69 {strides = array<i32>} : memref<144x256xbf16, #tpu.memory_space<vmem>>, vector<16x256xbf16>,
    %c0_33 = arith.constant 0 : index
    %c0_34 = arith.constant 0 : index
    %c128_35 = arith.constant 128 : index
    %71 = vector.load %arg4[%c0_33, %c0_34, %c128_35] : memref<1x16x512xf32, #tpu.memory_space<vmem>>, vector<1x16x256xf32>
    %72 = vector.shape_cast %71 : vector<1x16x256xf32> to vector<16x256xf32>
    %73 = arith.truncf %72 : vector<16x256xf32> to vector<16x256xbf16>
    %c64 = arith.constant 64 : index
    %c0_36 = arith.constant 0 : index
    %74 = vector.load %arg5[%c64, %c0_36] : memref<144x256xbf16, #tpu.memory_space<vmem>>, vector<16x256xbf16>
    tpu.vector_store %arg5[%c64, %c0_36], %73 {strides = array<i32>} : memref<144x256xbf16, #tpu.memory_space<vmem>>, vector<16x256xbf16>,
    %c0_37 = arith.constant 0 : index
    %c0_38 = arith.constant 0 : index
    %c129 = arith.constant 129 : index
    %75 = vector.load %arg4[%c0_37, %c0_38, %c129] : memref<1x16x512xf32, #tpu.memory_space<vmem>>, vector<1x16x256xf32>
    %76 = vector.shape_cast %75 : vector<1x16x256xf32> to vector<16x256xf32>
    %77 = arith.mulf %76, %38 : vector<16x256xf32>
    %78 = arith.truncf %77 : vector<16x256xf32> to vector<16x256xbf16>
    %c80 = arith.constant 80 : index
    %c0_39 = arith.constant 0 : index
    %79 = vector.load %arg5[%c80, %c0_39] : memref<144x256xbf16, #tpu.memory_space<vmem>>, vector<16x256xbf16>
    tpu.vector_store %arg5[%c80, %c0_39], %78 {strides = array<i32>} : memref<144x256xbf16, #tpu.memory_space<vmem>>, vector<16x256xbf16>,
    %c0_40 = arith.constant 0 : index
    %c0_41 = arith.constant 0 : index
    %c143 = arith.constant 143 : index
    %80 = vector.load %arg4[%c0_40, %c0_41, %c143] : memref<1x16x512xf32, #tpu.memory_space<vmem>>, vector<1x16x256xf32>
    %81 = vector.shape_cast %80 : vector<1x16x256xf32> to vector<16x256xf32>
    %82 = arith.mulf %81, %27 : vector<16x256xf32>
    %83 = arith.truncf %82 : vector<16x256xf32> to vector<16x256xbf16>
    %c96 = arith.constant 96 : index
    %c0_42 = arith.constant 0 : index
    %84 = vector.load %arg5[%c96, %c0_42] : memref<144x256xbf16, #tpu.memory_space<vmem>>, vector<16x256xbf16>
    tpu.vector_store %arg5[%c96, %c0_42], %83 {strides = array<i32>} : memref<144x256xbf16, #tpu.memory_space<vmem>>, vector<16x256xbf16>,
    %c0_43 = arith.constant 0 : index
    %c0_44 = arith.constant 0 : index
    %c144 = arith.constant 144 : index
    %85 = vector.load %arg4[%c0_43, %c0_44, %c144] : memref<1x16x512xf32, #tpu.memory_space<vmem>>, vector<1x16x256xf32>
    %86 = vector.shape_cast %85 : vector<1x16x256xf32> to vector<16x256xf32>
    %87 = arith.truncf %86 : vector<16x256xf32> to vector<16x256xbf16>
    %c112_45 = arith.constant 112 : index
    %c0_46 = arith.constant 0 : index
    %88 = vector.load %arg5[%c112_45, %c0_46] : memref<144x256xbf16, #tpu.memory_space<vmem>>, vector<16x256xbf16>
    tpu.vector_store %arg5[%c112_45, %c0_46], %87 {strides = array<i32>} : memref<144x256xbf16, #tpu.memory_space<vmem>>, vector<16x256xbf16>,
    %c0_47 = arith.constant 0 : index
    %c0_48 = arith.constant 0 : index
    %c145 = arith.constant 145 : index
    %89 = vector.load %arg4[%c0_47, %c0_48, %c145] : memref<1x16x512xf32, #tpu.memory_space<vmem>>, vector<1x16x256xf32>
    %90 = vector.shape_cast %89 : vector<1x16x256xf32> to vector<16x256xf32>
    %91 = arith.mulf %90, %38 : vector<16x256xf32>
    %92 = arith.truncf %91 : vector<16x256xf32> to vector<16x256xbf16>
    %c128_49 = arith.constant 128 : index
    %c0_50 = arith.constant 0 : index
    %93 = vector.load %arg5[%c128_49, %c0_50] : memref<144x256xbf16, #tpu.memory_space<vmem>>, vector<16x256xbf16>
    tpu.vector_store %arg5[%c128_49, %c0_50], %92 {strides = array<i32>} : memref<144x256xbf16, #tpu.memory_space<vmem>>, vector<16x256xbf16>,
    %c0_51 = arith.constant 0 : index
    %c0_52 = arith.constant 0 : index
    %c0_53 = arith.constant 0 : index
    %94 = vector.load %arg2[%c0_51, %c0_52, %c0_53] : memref<2x16x144xbf16, #tpu.memory_space<vmem>>, vector<1x16x144xbf16>
    %95 = vector.shape_cast %94 : vector<1x16x144xbf16> to vector<16x144xbf16>
    %c0_54 = arith.constant 0 : index
    %c0_55 = arith.constant 0 : index
    %96 = vector.load %arg5[%c0_54, %c0_55] : memref<144x256xbf16, #tpu.memory_space<vmem>>, vector<144x256xbf16>
    %cst_56 = arith.constant dense<0.000000e+00> : vector<16x256xf32>
    %97 = tpu.matmul %95, %96, %cst_56 {dimension_numbers = #tpu.dot_dimension_numbers<[1], [0], [0], [1], [0, 0, 1, 1], [], []>} : vector<16x144xbf16>, vector<144x256xbf16>, vector<16x256xf32> -> vector<16x256xf32>
    %cst_57 = arith.constant dense<0.000000e+00> : vector<16xf32>
    %98 = vector.multi_reduction <add>, %97, %cst_57 [1] : vector<16x256xf32> to vector<16xf32>
    %99 = vector.shape_cast %98 : vector<16xf32> to vector<16x1xf32>
    %cst_58 = arith.constant 2.560000e+02 : f32
    %100 = vector.broadcast %cst_58 : f32 to vector<16x1xf32>
    %101 = arith.divf %99, %100 : vector<16x1xf32>
    %102 = vector.broadcast %101 : vector<16x1xf32> to vector<16x256xf32>
    %103 = arith.subf %97, %102 : vector<16x256xf32>
    %104 = arith.mulf %103, %103 : vector<16x256xf32>
    %cst_59 = arith.constant dense<0.000000e+00> : vector<16xf32>
    %105 = vector.multi_reduction <add>, %104, %cst_59 [1] : vector<16x256xf32> to vector<16xf32>
    %106 = vector.shape_cast %105 : vector<16xf32> to vector<16x1xf32>
    %cst_60 = arith.constant 2.560000e+02 : f32
    %107 = vector.broadcast %cst_60 : f32 to vector<16x1xf32>
    %108 = arith.divf %106, %107 : vector<16x1xf32>
    %109 = vector.broadcast %101 : vector<16x1xf32> to vector<16x256xf32>
    %110 = arith.subf %97, %109 : vector<16x256xf32>
    %cst_61 = arith.constant 9.99999974E-6 : f32
    %111 = vector.broadcast %cst_61 : f32 to vector<16x1xf32>
    %112 = arith.addf %108, %111 : vector<16x1xf32>
    %113 = math.rsqrt %112 : vector<16x1xf32>
    %114 = vector.broadcast %113 : vector<16x1xf32> to vector<16x256xf32>
    %115 = arith.mulf %110, %114 : vector<16x256xf32>
    %cst_62 = arith.constant 0.000000e+00 : f32
    %116 = vector.broadcast %cst_62 : f32 to vector<16x256xf32>
    %117 = arith.maximumf %115, %116 : vector<16x256xf32>
    %c0_63 = arith.constant 0 : index
    %c0_64 = arith.constant 0 : index
    %c128_65 = arith.constant 128 : index
    %118 = vector.load %arg4[%c0_63, %c0_64, %c128_65] : memref<1x16x512xf32, #tpu.memory_space<vmem>>, vector<1x16x256xf32>
    %119 = vector.shape_cast %118 : vector<1x16x256xf32> to vector<16x256xf32>
    %120 = vector.shape_cast %117 : vector<16x256xf32> to vector<1x16x256xf32>
    tpu.vector_store %arg4[%c0_63, %c0_64, %c128_65], %120 {strides = array<i32>} : memref<1x16x512xf32, #tpu.memory_space<vmem>>, vector<1x16x256xf32>,
    %c0_66 = arith.constant 0 : index
    %c0_67 = arith.constant 0 : index
    %c111_68 = arith.constant 111 : index
    %121 = vector.load %arg4[%c0_66, %c0_67, %c111_68] : memref<1x16x512xf32, #tpu.memory_space<vmem>>, vector<1x16x256xf32>
    %122 = vector.shape_cast %121 : vector<1x16x256xf32> to vector<16x256xf32>
    %123 = arith.mulf %122, %27 : vector<16x256xf32>
    %124 = arith.truncf %123 : vector<16x256xf32> to vector<16x256xbf16>
    %c0_69 = arith.constant 0 : index
    %c0_70 = arith.constant 0 : index
    %125 = vector.load %arg5[%c0_69, %c0_70] : memref<144x256xbf16, #tpu.memory_space<vmem>>, vector<16x256xbf16>
    tpu.vector_store %arg5[%c0_69, %c0_70], %124 {strides = array<i32>} : memref<144x256xbf16, #tpu.memory_space<vmem>>, vector<16x256xbf16>,
    %c0_71 = arith.constant 0 : index
    %c0_72 = arith.constant 0 : index
    %c112_73 = arith.constant 112 : index
    %126 = vector.load %arg4[%c0_71, %c0_72, %c112_73] : memref<1x16x512xf32, #tpu.memory_space<vmem>>, vector<1x16x256xf32>
    %127 = vector.shape_cast %126 : vector<1x16x256xf32> to vector<16x256xf32>
    %128 = arith.truncf %127 : vector<16x256xf32> to vector<16x256xbf16>
    %c16_74 = arith.constant 16 : index
    %c0_75 = arith.constant 0 : index
    %129 = vector.load %arg5[%c16_74, %c0_75] : memref<144x256xbf16, #tpu.memory_space<vmem>>, vector<16x256xbf16>
    tpu.vector_store %arg5[%c16_74, %c0_75], %128 {strides = array<i32>} : memref<144x256xbf16, #tpu.memory_space<vmem>>, vector<16x256xbf16>,
    %c0_76 = arith.constant 0 : index
    %c0_77 = arith.constant 0 : index
    %c113_78 = arith.constant 113 : index
    %130 = vector.load %arg4[%c0_76, %c0_77, %c113_78] : memref<1x16x512xf32, #tpu.memory_space<vmem>>, vector<1x16x256xf32>
    %131 = vector.shape_cast %130 : vector<1x16x256xf32> to vector<16x256xf32>
    %132 = arith.mulf %131, %38 : vector<16x256xf32>
    %133 = arith.truncf %132 : vector<16x256xf32> to vector<16x256xbf16>
    %c32_79 = arith.constant 32 : index
    %c0_80 = arith.constant 0 : index
    %134 = vector.load %arg5[%c32_79, %c0_80] : memref<144x256xbf16, #tpu.memory_space<vmem>>, vector<16x256xbf16>
    tpu.vector_store %arg5[%c32_79, %c0_80], %133 {strides = array<i32>} : memref<144x256xbf16, #tpu.memory_space<vmem>>, vector<16x256xbf16>,
    %c0_81 = arith.constant 0 : index
    %c0_82 = arith.constant 0 : index
    %c127_83 = arith.constant 127 : index
    %135 = vector.load %arg4[%c0_81, %c0_82, %c127_83] : memref<1x16x512xf32, #tpu.memory_space<vmem>>, vector<1x16x256xf32>
    %136 = vector.shape_cast %135 : vector<1x16x256xf32> to vector<16x256xf32>
    %137 = arith.mulf %136, %27 : vector<16x256xf32>
    %138 = arith.truncf %137 : vector<16x256xf32> to vector<16x256xbf16>
    %c48_84 = arith.constant 48 : index
    %c0_85 = arith.constant 0 : index
    %139 = vector.load %arg5[%c48_84, %c0_85] : memref<144x256xbf16, #tpu.memory_space<vmem>>, vector<16x256xbf16>
    tpu.vector_store %arg5[%c48_84, %c0_85], %138 {strides = array<i32>} : memref<144x256xbf16, #tpu.memory_space<vmem>>, vector<16x256xbf16>,
    %c0_86 = arith.constant 0 : index
    %c0_87 = arith.constant 0 : index
    %c128_88 = arith.constant 128 : index
    %140 = vector.load %arg4[%c0_86, %c0_87, %c128_88] : memref<1x16x512xf32, #tpu.memory_space<vmem>>, vector<1x16x256xf32>
    %141 = vector.shape_cast %140 : vector<1x16x256xf32> to vector<16x256xf32>
    %142 = arith.truncf %141 : vector<16x256xf32> to vector<16x256xbf16>
    %c64_89 = arith.constant 64 : index
    %c0_90 = arith.constant 0 : index
    %143 = vector.load %arg5[%c64_89, %c0_90] : memref<144x256xbf16, #tpu.memory_space<vmem>>, vector<16x256xbf16>
    tpu.vector_store %arg5[%c64_89, %c0_90], %142 {strides = array<i32>} : memref<144x256xbf16, #tpu.memory_space<vmem>>, vector<16x256xbf16>,
    %c0_91 = arith.constant 0 : index
    %c0_92 = arith.constant 0 : index
    %c129_93 = arith.constant 129 : index
    %144 = vector.load %arg4[%c0_91, %c0_92, %c129_93] : memref<1x16x512xf32, #tpu.memory_space<vmem>>, vector<1x16x256xf32>
    %145 = vector.shape_cast %144 : vector<1x16x256xf32> to vector<16x256xf32>
    %146 = arith.mulf %145, %38 : vector<16x256xf32>
    %147 = arith.truncf %146 : vector<16x256xf32> to vector<16x256xbf16>
    %c80_94 = arith.constant 80 : index
    %c0_95 = arith.constant 0 : index
    %148 = vector.load %arg5[%c80_94, %c0_95] : memref<144x256xbf16, #tpu.memory_space<vmem>>, vector<16x256xbf16>
    tpu.vector_store %arg5[%c80_94, %c0_95], %147 {strides = array<i32>} : memref<144x256xbf16, #tpu.memory_space<vmem>>, vector<16x256xbf16>,
    %c0_96 = arith.constant 0 : index
    %c0_97 = arith.constant 0 : index
    %c143_98 = arith.constant 143 : index
    %149 = vector.load %arg4[%c0_96, %c0_97, %c143_98] : memref<1x16x512xf32, #tpu.memory_space<vmem>>, vector<1x16x256xf32>
    %150 = vector.shape_cast %149 : vector<1x16x256xf32> to vector<16x256xf32>
    %151 = arith.mulf %150, %27 : vector<16x256xf32>
    %152 = arith.truncf %151 : vector<16x256xf32> to vector<16x256xbf16>
    %c96_99 = arith.constant 96 : index
    %c0_100 = arith.constant 0 : index
    %153 = vector.load %arg5[%c96_99, %c0_100] : memref<144x256xbf16, #tpu.memory_space<vmem>>, vector<16x256xbf16>
    tpu.vector_store %arg5[%c96_99, %c0_100], %152 {strides = array<i32>} : memref<144x256xbf16, #tpu.memory_space<vmem>>, vector<16x256xbf16>,
    %c0_101 = arith.constant 0 : index
    %c0_102 = arith.constant 0 : index
    %c144_103 = arith.constant 144 : index
    %154 = vector.load %arg4[%c0_101, %c0_102, %c144_103] : memref<1x16x512xf32, #tpu.memory_space<vmem>>, vector<1x16x256xf32>
    %155 = vector.shape_cast %154 : vector<1x16x256xf32> to vector<16x256xf32>
    %156 = arith.truncf %155 : vector<16x256xf32> to vector<16x256xbf16>
    %c112_104 = arith.constant 112 : index
    %c0_105 = arith.constant 0 : index
    %157 = vector.load %arg5[%c112_104, %c0_105] : memref<144x256xbf16, #tpu.memory_space<vmem>>, vector<16x256xbf16>
    tpu.vector_store %arg5[%c112_104, %c0_105], %156 {strides = array<i32>} : memref<144x256xbf16, #tpu.memory_space<vmem>>, vector<16x256xbf16>,
    %c0_106 = arith.constant 0 : index
    %c0_107 = arith.constant 0 : index
    %c145_108 = arith.constant 145 : index
    %158 = vector.load %arg4[%c0_106, %c0_107, %c145_108] : memref<1x16x512xf32, #tpu.memory_space<vmem>>, vector<1x16x256xf32>
    %159 = vector.shape_cast %158 : vector<1x16x256xf32> to vector<16x256xf32>
    %160 = arith.mulf %159, %38 : vector<16x256xf32>
    %161 = arith.truncf %160 : vector<16x256xf32> to vector<16x256xbf16>
    %c128_109 = arith.constant 128 : index
    %c0_110 = arith.constant 0 : index
    %162 = vector.load %arg5[%c128_109, %c0_110] : memref<144x256xbf16, #tpu.memory_space<vmem>>, vector<16x256xbf16>
    tpu.vector_store %arg5[%c128_109, %c0_110], %161 {strides = array<i32>} : memref<144x256xbf16, #tpu.memory_space<vmem>>, vector<16x256xbf16>,
    %c1 = arith.constant 1 : index
    %c0_111 = arith.constant 0 : index
    %c0_112 = arith.constant 0 : index
    %163 = vector.load %arg2[%c1, %c0_111, %c0_112] : memref<2x16x144xbf16, #tpu.memory_space<vmem>>, vector<1x16x144xbf16>
    %164 = vector.shape_cast %163 : vector<1x16x144xbf16> to vector<16x144xbf16>
    %c0_113 = arith.constant 0 : index
    %c0_114 = arith.constant 0 : index
    %165 = vector.load %arg5[%c0_113, %c0_114] : memref<144x256xbf16, #tpu.memory_space<vmem>>, vector<144x256xbf16>
    %cst_115 = arith.constant dense<0.000000e+00> : vector<16x256xf32>
    %166 = tpu.matmul %164, %165, %cst_115 {dimension_numbers = #tpu.dot_dimension_numbers<[1], [0], [0], [1], [0, 0, 1, 1], [], []>} : vector<16x144xbf16>, vector<144x256xbf16>, vector<16x256xf32> -> vector<16x256xf32>
    %cst_116 = arith.constant dense<0.000000e+00> : vector<16xf32>
    %167 = vector.multi_reduction <add>, %166, %cst_116 [1] : vector<16x256xf32> to vector<16xf32>
    %168 = vector.shape_cast %167 : vector<16xf32> to vector<16x1xf32>
    %cst_117 = arith.constant 2.560000e+02 : f32
    %169 = vector.broadcast %cst_117 : f32 to vector<16x1xf32>
    %170 = arith.divf %168, %169 : vector<16x1xf32>
    %171 = vector.broadcast %170 : vector<16x1xf32> to vector<16x256xf32>
    %172 = arith.subf %166, %171 : vector<16x256xf32>
    %173 = arith.mulf %172, %172 : vector<16x256xf32>
    %cst_118 = arith.constant dense<0.000000e+00> : vector<16xf32>
    %174 = vector.multi_reduction <add>, %173, %cst_118 [1] : vector<16x256xf32> to vector<16xf32>
    %175 = vector.shape_cast %174 : vector<16xf32> to vector<16x1xf32>
    %cst_119 = arith.constant 2.560000e+02 : f32
    %176 = vector.broadcast %cst_119 : f32 to vector<16x1xf32>
    %177 = arith.divf %175, %176 : vector<16x1xf32>
    %178 = vector.broadcast %170 : vector<16x1xf32> to vector<16x256xf32>
    %179 = arith.subf %166, %178 : vector<16x256xf32>
    %cst_120 = arith.constant 9.99999974E-6 : f32
    %180 = vector.broadcast %cst_120 : f32 to vector<16x1xf32>
    %181 = arith.addf %177, %180 : vector<16x1xf32>
    %182 = math.rsqrt %181 : vector<16x1xf32>
    %183 = vector.broadcast %182 : vector<16x1xf32> to vector<16x256xf32>
    %184 = arith.mulf %179, %183 : vector<16x256xf32>
    %c0_121 = arith.constant 0 : index
    %c0_122 = arith.constant 0 : index
    %c0_123 = arith.constant 0 : index
    %185 = vector.load %arg1[%c0_121, %c0_122, %c0_123] : memref<1x16x256xf32, #tpu.memory_space<vmem>>, vector<1x16x256xf32>
    %186 = vector.shape_cast %185 : vector<1x16x256xf32> to vector<16x256xf32>
    %187 = arith.addf %184, %186 : vector<16x256xf32>
    %c0_124 = arith.constant 0 : index
    %c0_125 = arith.constant 0 : index
    %c0_126 = arith.constant 0 : index
    %188 = vector.load %arg3[%c0_124, %c0_125, %c0_126] : memref<1x16x256xf32, #tpu.memory_space<vmem>>, vector<1x16x256xf32>
    %189 = vector.shape_cast %188 : vector<1x16x256xf32> to vector<16x256xf32>
    %190 = vector.shape_cast %187 : vector<16x256xf32> to vector<1x16x256xf32>
    tpu.vector_store %arg3[%c0_124, %c0_125, %c0_126], %190 {strides = array<i32>} : memref<1x16x256xf32, #tpu.memory_space<vmem>>, vector<1x16x256xf32>,
    return
  }
  func.func @transform_0(%arg0: i32) -> (i32, i32, i32) {
    %c0_i32 = arith.constant 0 : i32
    %c0_i32_0 = arith.constant 0 : i32
    %c0_i32_1 = arith.constant 0 : i32
    return %arg0, %c0_i32, %c0_i32_0 : i32, i32, i32
  }
  func.func @transform_1(%arg0: i32) -> (i32, i32, i32) {
    %c0_i32 = arith.constant 0 : i32
    %c0_i32_0 = arith.constant 0 : i32
    %c0_i32_1 = arith.constant 0 : i32
    %c0_i32_2 = arith.constant 0 : i32
    return %c0_i32, %c0_i32_0, %c0_i32_1 : i32, i32, i32
  }
  func.func @transform_2(%arg0: i32) -> (i32, i32, i32) {
    %c0_i32 = arith.constant 0 : i32
    %c0_i32_0 = arith.constant 0 : i32
    %c0_i32_1 = arith.constant 0 : i32
    return %arg0, %c0_i32, %c0_i32_0 : i32, i32, i32
  }
}

</mosaic_0001>

<bundles_post_ra>
// kernel: tpu_custom_call.1
= control target key start
LH: loop header
LB: loop body
LE: loop exit
PB: predicated region body
PF: predicated region fallthrough
CT: control target
= control target key end

     0   :  { %7 = vsyncpa [#allocation5], 0  ;;  %s2680_s0 = inlined_call_operand.hbm [shape: f32[2,16,256], index: 0, kind: input, shape index: {}]   ;;  %s2681_s1 = inlined_call_operand.hbm [shape: bf16[2,16,144], index: 1, kind: input, shape index: {}]   ;;  %s2682_s2 = inlined_call_operand.hbm [shape: f32[2,16,256], index: 2, kind: output, shape index: {}]  }
   0x1   :  { %9 = vsyncpa [#allocation5 + $0x1], 0 }
   0x2   :  { %10 = vsyncpa [#allocation8], 0 }
   0x3   :  { %11 = vsyncpa [#allocation6], 0 }
   0x4   :  { %13 = vsyncpa [#allocation6 + $0x1], 0  ;;  %s2079_s9 = smov 0   ;;  %s2081_s10 = smov 0  }
   0x5   :  { %s2083_s11 = smov 0   ;;  %s2085_s12 = smov 0  }
   0x6 LB: > { %s2100_s13 = sadd.s32 4294967295, %s2044_s12   ;;  %s1602_s14 = sadd.s32 4294967294, %s2044_s12   ;;  %s2044_s12 = sphi %s2085_s12, %s2704_s12   ;;  %s2040_s11 = sphi %s2083_s11, %s2703_s11   ;;  %s2036_s10 = sphi %s2081_s10, %s2702_s10   ;;  %s2032_s9 = sphi %s2079_s9, %s2701_s9  }
   0x7   : > { %p39_p0 = scmp.ne.s32.totalorder %s2036_s10, %s2032_s9  ;;  %p2683_p1 = scmp.eq.s32.totalorder %s2100_s13, 0 }
   0x8   : > { %p90_p3 = scmp.eq.s32.totalorder %s1602_s14, 1  ;;  %p1603_p5 = scmp.ge.s32.totalorder %s2044_s12, 1 }
   0x9   : > { %p2109_p4 = por %p2683_p1, %p39_p0  ;;  %p97_p7 = scmp.lt.s32.totalorder %s2044_s12, 3 }
   0xa   : > { %p2114_p6 = por %p90_p3, %p39_p0  ;;  %s2046_s18 = smov [#allocation7]  }
   0xb   : > { %s2687_s15 = scalar_select %p2109_p4, 1, 0 }
   0xc   : > { %s2688_s16 = scalar_select %p2114_p6, 1, 0 }
   0xd   : > { %p2119_p8 = pnand %p1603_p5, %p97_p7  ;;  %s109_s19 = sshll.u32 %s2046_s18, 4  ;;  %s110_s19 = int_to_ptr.vmem [resolvable:$true] %s109_s19 }
   0xe   : > { %s2133_s21 = sadd.s32 1, %s2044_s12   ;;  %s26_s22 = sadd.s32 1, %s2040_s11 }
   0xf   : > { %s2689_s17 = scalar_select %p2119_p8, 1, 0 }
  0x10   : > { %p1814_p9 = pneg %p2119_p8  ;;  %s23_s23 = ssub.s32 %s2044_s12, %s2133_s21 }
  0x11   : > { %s1933_s24 = scalar_lea.vmem %s110_s19, 512  ;;  %p1941_p5 = scmp.lt.s32.totalorder %s110_s19, %s110_s19 }
  0x12   : > { %p2128_p11 = pnand %p1814_p9, %p2683_p1  ;;  %p1934_p13 = scmp.ne.s32.totalorder %s110_s19, %s1933_s24 }
  0x13   : > { %p1942_p7 = scmp.lt.s32.totalorder %s1933_s24, %s1933_s24 }
  0x14   : > { %p1924_p12 = pneg %p2128_p11 }
  0x15   : > { %p1943_p10 = por %p1942_p7, %p1941_p5 }
  0x16   : > { %p1936_p0 = pnand %p1934_p13, %p1924_p12 }
  0x18   : > { %p1937_p3 = pneg %p1936_p0 }
  0x1a   : > { %p1944_p2 = pnand %p1943_p10, %p1937_p3 }
  0x1c   : > { %1947 = shalt.err (!%p1944_p2)
}
  0x1d   : > { %s2047_s25 = smov 128   ;;  %s2048_s26 = smov 8  }
  0x1e   : > { %1817 = dma.hbm_to_vmem [thread:$0]  (!%p2128_p11), %s2681_s1, 512, %s110_s19, [#allocation8], %s2047_s25, %s2047_s25, %s2048_s26  }
  0x1f   : > { %p24_p9 = scmp.eq.s32.totalorder %s23_s23, 0  ;;  %p33_p12 = scmp.ne.s32.totalorder %s2040_s11, %s2036_s10 }
  0x20   : > { %p34_p10 = scmp.eq.s32.totalorder %s2044_s12, 0  ;;  %p1827_p2 = scmp.lt.s32.totalorder %s2044_s12, 2 }
  0x21   : > { %s2150_s29 = scalar_select %p24_p9, %s2040_s11, %s26_s22  }
  0x22   : > { %p35_p13 = por %p34_p10, %p33_p12  ;;  %p2691_p0 = scmp.eq.s32.totalorder %s2100_s13, 1 }
  0x23   : > { %s123_s3 = sand.u32 1, %s2040_s11   ;;  %s1732_s4 = sshll.u32 %s2044_s12, 9 }
  0x24   : > { %p2154_p3 = por %p2691_p0, %p33_p12  ;;  %s1606_s5 = sshll.u32 %s123_s3, 5 }
  0x25   : > { %s2163_s8 = scalar_lea.hbm %s2680_s0, %s1732_s4  ;;  %s127_s14 = scalar_lea.vmem [#allocation4], %s1606_s5 }
  0x26   : > { %s2692_s30 = scalar_select %p2154_p3, 1, 0 }
  0x27   : > { %s134_s18 = sshll.u32 %s127_s14, 4  ;;  %p2165_p11 = pnand %p1827_p2, %p35_p13  ;;  %s2169_s18 = int_to_ptr.vmem [resolvable:$true] %s134_s18 }
  0x28   : > { %s2171_s20 = scalar_lea.sflag [#allocation5], %s123_s3  ;;  %s1948_s22 = scalar_lea.hbm %s2163_s8, 512 }
  0x29   : > { %p1949_p5 = scmp.ne.s32.totalorder %s2163_s8, %s1948_s22  ;;  %p1950_p7 = pneg %p2165_p11 }
  0x2a   : > { %s1953_s25 = scalar_lea.hbm %s2680_s0, 1024  ;;  %p1954_p10 = scmp.lt.s32.totalorder %s2163_s8, %s2680_s0 }
  0x2b   : > { %p1951_p9 = pnand %p1950_p7, %p1949_p5  ;;  %p1955_p2 = scmp.lt.s32.totalorder %s1953_s25, %s1948_s22 }
  0x2d   : > { %p1952_p12 = pneg %p1951_p9  ;;  %p1956_p13 = por %p1955_p2, %p1954_p10 }
  0x2f   : > { %p1957_p0 = pnand %p1956_p13, %p1952_p12 }
  0x31   : > { %1960 = shalt.err (!%p1957_p0)
}
  0x32   : > { %s1961_s28 = scalar_lea.vmem %s2169_s18, 512  ;;  %s2049_s3 = smov [#allocation4]  }
  0x33   : > { %p1962_p1 = scmp.ne.s32.totalorder %s2169_s18, %s1961_s28  ;;  %s1966_s4 = sshll.u32 %s2049_s3, 4  ;;  %s1967_s4 = int_to_ptr.vmem [resolvable:$false] %s1966_s4 }
  0x34   : > { %s1968_s5 = scalar_lea.vmem %s1967_s4, 1024  ;;  %p1969_p9 = scmp.lt.s32.totalorder %s2169_s18, %s1967_s4 }
  0x35   : > { %p1964_p6 = pnand %p1962_p1, %p1950_p7  ;;  %p1970_p3 = scmp.lt.s32.totalorder %s1968_s5, %s1961_s28 }
  0x37   : > { %p1965_p5 = pneg %p1964_p6  ;;  %p1971_p4 = por %p1970_p3, %p1969_p9 }
  0x39   : > { %p1972_p8 = pnand %p1971_p4, %p1965_p5 }
  0x3b   : > { %1975 = shalt.err (!%p1972_p8)
}
  0x3c   : > { %s2050_s6 = smov 256   ;;  %s2051_s7 = smov 16  }
  0x3d   : > { %1821 = dma.hbm_to_vmem [thread:$0]  (!%p2165_p11), %s2163_s8, 512, %s2169_s18, %s2171_s20, %s2050_s6, %s2050_s6, %s2051_s7  }
  0x3e   : > { %p2694_p1 = scmp.ne.s32.totalorder %s2689_s17, 0 }
  0x3f   : > { %s2195_s14 = sand.u32 (!%p2694_p1), 1, %s2036_s10   ;;  %p2695_p4 = scmp.ne.s32.totalorder (!%p2694_p1), %s2687_s15, 0 }
  0x40   : > { %146 = sbr.rel (%p2694_p1) target bundleno = 1579 (0x62b), region = 28  ;;  %s1610_s22 = sshll.u32 (!%p2694_p1), %s2195_s14, 5 }
  0x41   : > { %s149_s23 = scalar_lea.sflag (!%p2694_p1), [#allocation5], %s2195_s14  ;;  %s2201_s24 = scalar_lea.vmem (!%p2694_p1), [#allocation4], %s1610_s22 }
  0x45   : > { %2019 = dma.done.wait (%p2695_p4), %s149_s23, 512  }
  0x46   : > { %2021 = vsyncadd (%p2695_p4), %s149_s23, 4294966784  ;;  %v178_v0 = vlaneseq  ;;  %p2696_p6 = scmp.eq.s32.totalorder %s2100_s13, 0 }
  0x48   : > { %2023 = dma.done.wait (%p2696_p6), [#allocation8], 512   ;;  %p2697_p8 = pmov %p2696_p6 }
  0x49   : > { %v179_v1 = vand.u32 127, %v178_v0  ;;  %v2052_v9 = vmov 0.0   ;;  %s2053_s15 = smov 15   ;;  %s2054_s17 = smov 127   ;;  %v2220_v16 = vld [vmem:[%s2201_s24] sm:$0xff]  ;;  %v2223_v17 = vld [vmem:[%s2201_s24 + $0x8] sm:$0xff] }
  0x4a   : > { %2025 = vsyncadd (%p2697_p8), [#allocation8], 4294966784  ;;  %s2055_s8 = smov 1   ;;  %s2056_s18 = smov 113   ;;  %v1749_v18 = vpack.c.bf16 %v2223_v17, %v2220_v16  ;;  %v2230_v19 = vld [vmem:[%s2201_s24 + $0x10] sm:$0xff]  ;;  %v2233_v20 = vld [vmem:[%s2201_s24 + $0x18] sm:$0xff]  ;;  %v1738_v23 = vpack.c.bf16 %v2223_v17, %v2223_v17  ;;  %v1737_v24 = vpack.c.bf16 %v2220_v16, %v2052_v9 }
  0x4b   : > { %v180_v2 = vadd.s32 128, %v179_v1  ;;  %v185_v3 = vand.u32 15, %v179_v1  ;;  %s2057_s19 = smov 111   ;;  %s2058_s20 = smov 17   ;;  %v2059_v21 = vmov 0.0|0.0   ;;  %v1750_v22 = vpack.c.bf16 %v2233_v20, %v2230_v19 }
  0x4c   : > { %s2060_s25 = smov 112   ;;  %s2061_s26 = smov 16   ;;  %v1740_v25 = vpack.c.bf16 %v2233_v20, %v2233_v20  ;;  %v1739_v26 = vpack.c.bf16 %v2230_v19, %v2052_v9  ;;  %vm397_vm4 = vcmask 121856   ;;  %vm455_vm5 = vcmask 7168  }
  0x4d   : > { %v192_v4 = vand.u32 15, %v180_v2  ;;  %v205_v5 = vadd.s32 4294967295, %v185_v3  ;;  %v217_v6 = vadd.s32 1, %v185_v3  ;;  %vm415_vm6 = vcmask 1039360   ;;  %s1801_s27 = sshll.u32 %s2100_s13, 9  ;;  %s176_s28 = scalar_lea.vmem [#allocation9], %s1610_s22 }
  0x4e   : > { %vm357_vm7 = vcmask 924672   ;;  %vm292_vm8 = vcmask 1043456   ;;  %vm632_vm9 = vcmask 916480   ;;  %vm253_vm10 = vcmask 908288   ;;  %s1519_s3 = sshll.u32 %s176_s28, 4  ;;  %s2634_s6 = scalar_lea.hbm %s2682_s2, %s1801_s27  ;;  %s2636_s3 = int_to_ptr.vmem [resolvable:$true] %s1519_s3 }
  0x4f   : > { %v206_v7 = vadd.s32 4294967295, %v192_v4  ;;  %vm207_vm0 = vcmp.ge.s32.totalorder %v205_v5, 0  ;;  %v218_v8 = vadd.s32 1, %v192_v4  ;;  %vm221_vm1 = vcmp.lt.s32.totalorder %v217_v6, 16  ;;  %s1506_s13 = scalar_lea.sflag [#allocation6], %s2195_s14  ;;  %s1976_s7 = scalar_lea.vmem %s2636_s3, 512 }
  0x50   : > { %v1613_v10 = vsel %vm207_vm0, 1.0, %v2052_v9  ;;  %v1615_v12 = vsel %vm221_vm1, 1.0, %v2052_v9  ;;  %vm294_vm11 = vcmask 138240   ;;  %vm337_vm12 = vcmask 130048   ;;  %p1977_p3 = scmp.ne.s32.totalorder %s2636_s3, %s1976_s7  ;;  %p2698_p11 = scmp.ne.s32.totalorder %s2692_s30, 0 }
  0x51   : > { %vm208_vm2 = vcmp.ge.s32.totalorder %v206_v7, 0  ;;  %vm222_vm3 = vcmp.lt.s32.totalorder %v218_v8, 16  ;;  %s2062_s22 = smov [#allocation9]  }
  0x52   : > { %v1614_v11 = vsel %vm208_vm2, 1.0, %v2052_v9  ;;  %v1616_v13 = vsel %vm222_vm3, 1.0, %v2052_v9  ;;  %p1978_p7 = pnand %p1977_p3, %p2698_p11  ;;  %s1980_s23 = sshll.u32 %s2062_s22, 4  ;;  %s1981_s23 = int_to_ptr.vmem [resolvable:$false] %s1980_s23 }
  0x53   : > { %v1878_v14 = vpack.i.bf16 %v1614_v11, %v1613_v10  ;;  %v1883_v15 = vpack.i.bf16 %v1616_v13, %v1615_v12  ;;  %p1983_p10 = scmp.lt.s32.totalorder %s2636_s3, %s1981_s23 }
  0x54   : > { %p1979_p12 = pneg %p1978_p7 }
  0x55   : > { %1879 = vrot.lane.b32.xlu0 %v1878_v14, %s2053_s15  ;;  %1889 = vrot.lane.b32.xlu1 %v1878_v14, %s2054_s17 }
  0x59   : > { %1884 = vrot.lane.b32.xlu0 %v1883_v15, %s2055_s8  ;;  %1894 = vrot.lane.b32.xlu1 %v1883_v15, %s2056_s18 }
  0x5d   : > { %1899 = vrot.lane.b32.xlu0 %v1878_v14, %s2057_s19  ;;  %1904 = vrot.lane.b32.xlu1 %v1883_v15, %s2058_s20 }
  0x61   : > { %621 = vrot.lane.b32.xlu1 %v2059_v21, %s2060_s25  ;;  %619 = vrot.lane.b32.xlu0 %v1749_v18, %s2060_s25 }
  0x65   : > { %625 = vrot.lane.b32.xlu1 %v2059_v21, %s2060_s25  ;;  %623 = vrot.lane.b32.xlu0 %v1750_v22, %s2060_s25 }
  0x69   : > { %326 = vrot.lane.b32.xlu1 %v1738_v23, %s2061_s26  ;;  %324 = vrot.lane.b32.xlu0 %v1737_v24, %s2061_s26 }
  0x6d   : > { %330 = vrot.lane.b32.xlu1 %v1740_v25, %s2061_s26  ;;  %328 = vrot.lane.b32.xlu0 %v1739_v26, %s2061_s26 }
  0xc7   : > { %v1880_v27 = vpop.permute.xlu0 %1879  ;;  %v1890_v28 = vpop.permute.xlu1 %1889 }
  0xc8   : > { %v1882_v29 = vunpack.i.h.bf16 %v1880_v27  ;;  %v2255_v30 = vunpack.i.l.bf16 %v1880_v27  ;;  %v2288_v49 = vunpack.i.h.bf16 %v1890_v28  ;;  %v1891_v50 = vunpack.i.l.bf16 %v1890_v28 }
  0xca   : > { %v556_v31 = vmul.f32 0.0, %v1882_v29  ;;  %v2259_v32 = vsel %vm397_vm4, %v2255_v30, %v1882_v29  ;;  %v554_v33 = vmul.f32 %v2255_v30, %v2220_v16  ;;  %v557_v41 = vmul.f32 %v2255_v30, %v2230_v19 }
  0xcb   : > { %v1885_v34 = vpop.permute.xlu0 %1884  ;;  %v555_v35 = vmul.f32 %v2259_v32, %v2223_v17  ;;  %v1895_v36 = vpop.permute.xlu1 %1894  ;;  %v558_v42 = vmul.f32 %v2259_v32, %v2233_v20  ;;  %v2297_v56 = vsel %vm415_vm6, %v1891_v50, %v2288_v49  ;;  %v422_v59 = vmul.f32 %v2288_v49, %v2223_v17 }
  0xcc   : > { %v2265_v37 = vpack.c.bf16 %v556_v31, %v556_v31  ;;  %v1887_v38 = vunpack.i.h.bf16 %v1885_v34  ;;  %v2267_v39 = vunpack.i.l.bf16 %v1885_v34  ;;  %v2307_v60 = vmul.f32 0.0, %v1891_v50 }
  0xcd   : > { %v1755_v40 = vpack.c.bf16 %v555_v35, %v554_v33  ;;  %v1757_v51 = vpack.c.bf16 %v558_v42, %v557_v41  ;;  %v421_v61 = vmul.f32 %v2297_v56, %v2220_v16  ;;  %v2312_v0 = vunpack.i.h.bf16 %v1895_v36 }
  0xce   : > { %v498_v43 = vmul.f32 0.0, %v1887_v38  ;;  %v2275_v44 = vsel %vm455_vm5, %v2267_v39, %v1887_v38  ;;  %578 = vrot.lane.b32.xlu1 %v2265_v37, %s2056_s18  ;;  %v496_v45 = vmul.f32 %v2267_v39, %v2220_v16  ;;  %v499_v57 = vmul.f32 %v2267_v39, %v2230_v19 }
  0xcf   : > { %576 = vrot.lane.b32.xlu0 %v1755_v40, %s2056_s18  ;;  %v497_v46 = vmul.f32 %v2275_v44, %v2223_v17  ;;  %v2284_v47 = vpop.permute.xlu0 %1899  ;;  %v2286_v48 = vpop.permute.xlu1 %1904  ;;  %v500_v58 = vmul.f32 %v2275_v44, %v2233_v20  ;;  %v1896_v1 = vunpack.i.l.bf16 %v1895_v36  ;;  %v1746_v4 = vpack.c.bf16 %v422_v59, %v422_v59 }
  0xd0   : > { %v2290_v52 = vpack.c.bf16 %v498_v43, %v498_v43  ;;  %v1745_v8 = vpack.c.bf16 %v421_v61, %v2307_v60  ;;  %v425_v11 = vmul.f32 %v2288_v49, %v2233_v20  ;;  %v424_v14 = vmul.f32 %v2297_v56, %v2230_v19 }
  0xd1   : > { %v1751_v53 = vpack.c.bf16 %v497_v46, %v496_v45  ;;  %v1753_v2 = vpack.c.bf16 %v500_v58, %v499_v57  ;;  %v2320_v10 = vsel %vm357_vm7, %v1896_v1, %v2312_v0  ;;  %v364_v22 = vmul.f32 %v2312_v0, %v2223_v17 }
  0xd2   : > { %582 = vrot.lane.b32.xlu1 %v2265_v37, %s2056_s18  ;;  %v2333_v25 = vmul.f32 0.0, %v1896_v1  ;;  %v363_v26 = vmul.f32 %v2320_v10, %v2220_v16  ;;  %v1748_v27 = vpack.c.bf16 %v425_v11, %v425_v11  ;;  %v2339_v28 = vunpack.i.h.bf16 %v2284_v47 }
  0xd3   : > { %580 = vrot.lane.b32.xlu0 %v1757_v51, %s2056_s18  ;;  %v622_v54 = vpop.permute.xlu1 %621  ;;  %v620_v55 = vpop.permute.xlu0 %619  ;;  %v1901_v29 = vunpack.i.l.bf16 %v2284_v47  ;;  %v1747_v31 = vpack.c.bf16 %v424_v14, %v2307_v60  ;;  %v1742_v33 = vpack.c.bf16 %v364_v22, %v364_v22  ;;  %v367_v36 = vmul.f32 %v2312_v0, %v2233_v20 }
  0xd4   : > { %v628_v3 = vrot.slane %v622_v54, 4  ;;  %v627_v5 = vrot.slane %v620_v55, 4  ;;  %v1741_v34 = vpack.c.bf16 %v363_v26, %v2333_v25  ;;  %v366_v38 = vmul.f32 %v2320_v10, %v2230_v19 }
  0xd5   : > { %v2348_v35 = vsel %vm253_vm10, %v1901_v29, %v2339_v28  ;;  %v260_v40 = vmul.f32 %v2339_v28, %v2223_v17  ;;  %v2357_v41 = vmul.f32 0.0, %v1901_v29  ;;  %v1744_v43 = vpack.c.bf16 %v367_v36, %v367_v36 }
  0xd6   : > { %520 = vrot.lane.b32.xlu1 %v2290_v52, %s2054_s17  ;;  %v631_v12 = vsel %vm292_vm8, %v627_v5, %v628_v3  ;;  %v259_v42 = vmul.f32 %v2348_v35, %v2220_v16  ;;  %v1907_v45 = vunpack.i.h.bf16 %v2286_v48  ;;  %v2364_v46 = vunpack.i.l.bf16 %v2286_v48  ;;  %v1910_v3 = vld [vmem:[#allocation7 + $0x4] ss:$8 sps:$4 sm:$0xff]  }
  0xd7   : > { %518 = vrot.lane.b32.xlu0 %v1751_v53, %s2054_s17  ;;  %v626_v62 = vpop.permute.xlu1 %625  ;;  %v624_v63 = vpop.permute.xlu0 %623  ;;  %v633_v15 = vsel %vm632_vm9, %v620_v55, %v631_v12  ;;  %v1743_v47 = vpack.c.bf16 %v366_v38, %v2333_v25  ;;  %v1734_v50 = vpack.c.bf16 %v260_v40, %v260_v40  ;;  %v263_v54 = vmul.f32 %v2339_v28, %v2233_v20 }
  0xd8   : > { %v630_v6 = vrot.slane %v626_v62, 4  ;;  %v629_v7 = vrot.slane %v624_v63, 4  ;;  %v1733_v51 = vpack.c.bf16 %v259_v42, %v2357_v41  ;;  %v2372_v53 = vsel %vm294_vm11, %v2364_v46, %v1907_v45  ;;  %1671 = vmatprep.mubr.msk.bf16.mxu0 %vm337_vm12, %v1910_v3 }
  0xd9   : > { %v262_v48 = vmul.f32 %v2348_v35, %v2230_v19  ;;  %v657_v55 = vmul.f32 0.0, %v1907_v45  ;;  %v655_v57 = vmul.f32 %v2364_v46, %v2220_v16  ;;  %v656_v58 = vmul.f32 %v2372_v53, %v2223_v17 }
  0xda   : > { %524 = vrot.lane.b32.xlu1 %v2290_v52, %s2054_s17  ;;  %v634_v13 = vsel %vm292_vm8, %v629_v7, %v630_v6  ;;  %v1736_v59 = vpack.c.bf16 %v263_v54, %v263_v54  ;;  %v658_v1 = vmul.f32 %v2364_v46, %v2230_v19 }
  0xdb   : > { %522 = vrot.lane.b32.xlu0 %v1753_v2, %s2054_s17  ;;  %v635_v18 = vsel %vm632_vm9, %v624_v63, %v634_v13  ;;  %v1735_v61 = vpack.c.bf16 %v262_v48, %v2357_v41  ;;  %v2385_v62 = vpack.c.bf16 %v657_v55, %v657_v55  ;;  %v1763_v63 = vpack.c.bf16 %v656_v58, %v655_v57  ;;  %v2400_v5 = vpop.permute.xlu1 %326  ;;  %v2402_v6 = vpop.permute.xlu0 %324 }
  0xdc   : > { %v1668_v23 = vcombine.high %v633_v15, %v635_v18  ;;  %v1667_v24 = vcombine.low %v633_v15, %v635_v18  ;;  %v659_v2 = vmul.f32 %v2372_v53, %v2233_v20  ;;  %v1803_v58 = vpack.c.bf16 %v2233_v20, %v2223_v17 }
  0xdd   : > { %v332_v17 = vrot.slane %v2402_v6, 4 }
  0xde   : > { %444 = vrot.lane.b32.xlu1 %v1746_v4, %s2055_s8  ;;  %821 = vmatprep.subr.bf16.mxu0 %v1668_v23  ;;  %v1765_v4 = vpack.c.bf16 %v659_v2, %v658_v1 }
  0xdf   : > { %442 = vrot.lane.b32.xlu0 %v1745_v8, %s2055_s8  ;;  %822 = vmatpush1.bf16.msra.mxu0 %v1667_v24  ;;  %v2404_v7 = vpop.permute.xlu1 %330  ;;  %v2406_v8 = vpop.permute.xlu0 %328 }
  0xe2   : > { %448 = vrot.lane.b32.xlu1 %v1748_v27, %s2055_s8 }
  0xe3   : > { %446 = vrot.lane.b32.xlu0 %v1747_v31, %s2055_s8 }
  0xe6   : > { %386 = vrot.lane.b32.xlu1 %v1742_v33, %s2053_s15 }
  0xe7   : > { %384 = vrot.lane.b32.xlu0 %v1741_v34, %s2053_s15 }
  0xea   : > { %390 = vrot.lane.b32.xlu1 %v1744_v43, %s2053_s15 }
  0xeb   : > { %388 = vrot.lane.b32.xlu0 %v1743_v47, %s2053_s15 }
  0xee   : > { %282 = vrot.lane.b32.xlu1 %v1734_v50, %s2058_s20 }
  0xef   : > { %280 = vrot.lane.b32.xlu0 %v1733_v51, %s2058_s20 }
  0xf2   : > { %286 = vrot.lane.b32.xlu1 %v1736_v59, %s2058_s20 }
  0xf3   : > { %284 = vrot.lane.b32.xlu0 %v1735_v61, %s2058_s20 }
  0xf6   : > { %679 = vrot.lane.b32.xlu1 %v2385_v62, %s2057_s19 }
  0xf7   : > { %677 = vrot.lane.b32.xlu0 %v1763_v63, %s2057_s19 }
  0xfa   : > { %683 = vrot.lane.b32.xlu1 %v2385_v62, %s2057_s19 }
  0xfb   : > { %681 = vrot.lane.b32.xlu0 %v1765_v4, %s2057_s19 }
 0x140   : > { %v579_v11 = vpop.permute.xlu1 %578 }
 0x141   : > { %v577_v12 = vpop.permute.xlu0 %576  ;;  %v585_v13 = vrot.slane %v579_v11, 4  ;;  %v1802_v11 = vpack.c.bf16 %v2230_v19, %v2220_v16 }
 0x142   : > { %v584_v14 = vrot.slane %v577_v12, 4 }
 0x144   : > { %v583_v15 = vpop.permute.xlu1 %582  ;;  %v588_v23 = vsel %vm292_vm8, %v584_v14, %v585_v13  ;;  %v333_v14 = vrot.slane %v2400_v5, 4 }
 0x145   : > { %v587_v18 = vrot.slane %v583_v15, 4  ;;  %v581_v22 = vpop.permute.xlu0 %580  ;;  %v590_v29 = vsel %vm357_vm7, %v577_v12, %v588_v23 }
 0x146   : > { %v586_v24 = vrot.slane %v581_v22, 4 }
 0x148   : > { %v591_v26 = vsel %vm292_vm8, %v586_v24, %v587_v18  ;;  %v521_v27 = vpop.permute.xlu1 %520  ;;  %v335_v18 = vrot.slane %v2404_v7, 4 }
 0x149   : > { %v592_v31 = vsel %vm357_vm7, %v581_v22, %v591_v26  ;;  %v519_v33 = vpop.permute.xlu0 %518  ;;  %v527_v38 = vrot.slane %v521_v27, 4  ;;  %v334_v22 = vrot.slane %v2406_v8, 4 }
 0x14a   : > { %v1665_v34 = vcombine.low %v590_v29, %v592_v31  ;;  %v1666_v36 = vcombine.high %v590_v29, %v592_v31  ;;  %v526_v40 = vrot.slane %v519_v33, 4 }
 0x14b   : > { %v339_v7 = vsel %vm292_vm8, %v334_v22, %v335_v18 }
 0x14c   : > { %v525_v42 = vpop.permute.xlu1 %524  ;;  %823 = vmatprep.subr.bf16.mxu0 %v1666_v36  ;;  %v530_v47 = vsel %vm292_vm8, %v526_v40, %v527_v38 }
 0x14d   : > { %v529_v43 = vrot.slane %v525_v42, 4  ;;  %824 = vmatpush1.bf16.msra.mxu0 %v1665_v34  ;;  %v523_v45 = vpop.permute.xlu0 %522  ;;  %v532_v48 = vsel %vm415_vm6, %v519_v33, %v530_v47  ;;  %v336_v34 = vsel %vm292_vm8, %v332_v17, %v333_v14 }
 0x14e   : > { %v528_v50 = vrot.slane %v523_v45, 4 }
 0x150   : > { %v533_v51 = vsel %vm292_vm8, %v528_v50, %v529_v43  ;;  %v445_v54 = vpop.permute.xlu1 %444  ;;  %v338_v43 = vsel %vm337_vm12, %v2402_v6, %v336_v34 }
 0x151   : > { %v534_v55 = vsel %vm415_vm6, %v523_v45, %v533_v51  ;;  %v443_v57 = vpop.permute.xlu0 %442  ;;  %v451_v63 = vrot.slane %v445_v54, 4  ;;  %v340_v45 = vsel %vm337_vm12, %v2406_v8, %v339_v7 }
 0x152   : > { %v1663_v59 = vcombine.low %v532_v48, %v534_v55  ;;  %v1664_v61 = vcombine.high %v532_v48, %v534_v55  ;;  %v450_v1 = vrot.slane %v443_v57, 4  ;;  %v1655_v8 = vcombine.low %v338_v43, %v340_v45 }
 0x154   : > { %v449_v2 = vpop.permute.xlu1 %448  ;;  %825 = vmatprep.subr.bf16.mxu0 %v1664_v61  ;;  %v454_v12 = vsel %vm292_vm8, %v450_v1, %v451_v63 }
 0x155   : > { %v453_v3 = vrot.slane %v449_v2, 4  ;;  %826 = vmatpush1.bf16.msra.mxu0 %v1663_v59  ;;  %v447_v4 = vpop.permute.xlu0 %446  ;;  %v456_v23 = vsel %vm455_vm5, %v443_v57, %v454_v12 }
 0x156   : > { %v452_v13 = vrot.slane %v447_v4, 4  ;;  %827 = vmatprep.subr.bf16.mxu0 %v1803_v58  ;;  %v1656_v58 = vcombine.high %v338_v43, %v340_v45 }
 0x158   : > { %v457_v20 = vsel %vm292_vm8, %v452_v13, %v453_v3  ;;  %v387_v15 = vpop.permute.xlu1 %386 }
 0x159   : > { %v458_v24 = vsel %vm455_vm5, %v447_v4, %v457_v20  ;;  %828 = vmatpush1.bf16.msra.mxu0 %v1802_v11  ;;  %v385_v16 = vpop.permute.xlu0 %384  ;;  %v393_v27 = vrot.slane %v387_v15, 4 }
 0x15a   : > { %v1659_v19 = vcombine.low %v456_v23, %v458_v24  ;;  %v1660_v26 = vcombine.high %v456_v23, %v458_v24  ;;  %v392_v29 = vrot.slane %v385_v16, 4 }
 0x15c   : > { %v391_v5 = vpop.permute.xlu1 %390  ;;  %829 = vmatprep.subr.bf16.mxu0 %v1660_v26  ;;  %v396_v36 = vsel %vm292_vm8, %v392_v29, %v393_v27 }
 0x15d   : > { %v395_v31 = vrot.slane %v391_v5, 4  ;;  %830 = vmatpush1.bf16.msra.mxu0 %v1659_v19  ;;  %v389_v33 = vpop.permute.xlu0 %388  ;;  %v398_v47 = vsel %vm397_vm4, %v385_v16, %v396_v36  ;;  %v1908_v5 = vld [vmem:[#allocation7] ss:$8 sps:$4 sm:$0xff]  }
 0x15e   : > { %v394_v38 = vrot.slane %v389_v33, 4 }
 0x160   : > { %v399_v40 = vsel %vm292_vm8, %v394_v38, %v395_v31  ;;  %v283_v42 = vpop.permute.xlu1 %282 }
 0x161   : > { %v400_v50 = vsel %vm397_vm4, %v389_v33, %v399_v40  ;;  %v281_v51 = vpop.permute.xlu0 %280  ;;  %v289_v55 = vrot.slane %v283_v42, 4 }
 0x162   : > { %v1657_v54 = vcombine.low %v398_v47, %v400_v50  ;;  %v1658_v48 = vcombine.high %v398_v47, %v400_v50  ;;  %v288_v57 = vrot.slane %v281_v51, 4 }
 0x164   : > { %v287_v59 = vpop.permute.xlu1 %286  ;;  %831 = vmatprep.subr.bf16.mxu0 %v1658_v48  ;;  %v293_v6 = vsel %vm292_vm8, %v288_v57, %v289_v55 }
 0x165   : > { %v291_v61 = vrot.slane %v287_v59, 4  ;;  %832 = vmatpush1.bf16.msra.mxu0 %v1657_v54  ;;  %v285_v63 = vpop.permute.xlu0 %284  ;;  %v295_v4 = vsel %vm294_vm11, %v281_v51, %v293_v6 }
 0x166   : > { %v290_v1 = vrot.slane %v285_v63, 4  ;;  %833 = vmatprep.subr.bf16.mxu0 %v1656_v58 }
 0x168   : > { %v296_v2 = vsel %vm292_vm8, %v290_v1, %v291_v61  ;;  %v680_v3 = vpop.permute.xlu1 %679 }
 0x169   : > { %v297_v11 = vsel %vm294_vm11, %v285_v63, %v296_v2  ;;  %834 = vmatpush1.bf16.msra.mxu0 %v1655_v8  ;;  %v678_v12 = vpop.permute.xlu0 %677  ;;  %v686_v17 = vrot.slane %v680_v3, 4 }
 0x16a   : > { %v1653_v13 = vcombine.low %v295_v4, %v297_v11  ;;  %v1654_v14 = vcombine.high %v295_v4, %v297_v11  ;;  %v685_v20 = vrot.slane %v678_v12, 4 }
 0x16c   : > { %v684_v15 = vpop.permute.xlu1 %683  ;;  %835 = vmatprep.subr.bf16.mxu0 %v1654_v14  ;;  %v689_v23 = vsel %vm292_vm8, %v685_v20, %v686_v17 }
 0x16d   : > { %v688_v18 = vrot.slane %v684_v15, 4  ;;  %836 = vmatpush1.bf16.msra.mxu0 %v1653_v13  ;;  %v682_v22 = vpop.permute.xlu0 %681  ;;  %v691_v19 = vsel %vm253_vm10, %v678_v12, %v689_v23 }
 0x16e   : > { %v687_v24 = vrot.slane %v682_v22, 4 }
 0x170   : > { %v692_v16 = vsel %vm292_vm8, %v687_v24, %v688_v18 }
 0x171   : > { %v693_v26 = vsel %vm253_vm10, %v682_v22, %v692_v16 }
 0x172   : > { %v1669_v27 = vcombine.low %v691_v19, %v693_v26  ;;  %v1670_v29 = vcombine.high %v691_v19, %v693_v26 }
 0x174   : > { %851 = vmatprep.subr.bf16.mxu0 %v1670_v29 }
 0x175   : > { %852 = vmatpush2.bf16.msra.mxu0 %v1669_v27 }
 0x178   : > { %854 = vmatmul.mubr.bf16.vlgmr.msra.gmra.mxu0 %v1908_v5 }
 0x238   : > { %v855_v31 = vpop.f32.mrf.mxu0 }
 0x23a   : > { %v857_v33 = vpop.f32.mrf.mxu0 }
 0x23b   : > { %v864_v34 = vadd.f32 %v857_v33, %v855_v31 }
 0x23c   : > { %v859_v7 = vpop.f32.mrf.mxu0 }
 0x23d   : > { %865 = vadd.xlane.f32.xlu0 %v864_v34 }
 0x23e   : > { %v861_v36 = vpop.f32.mrf.mxu0 }
 0x23f   : > { %v867_v38 = vadd.f32 %v861_v36, %v859_v7 }
 0x241   : > { %868 = vadd.xlane.f32.xlu1 %v867_v38 }
 0x252   : > { %1233 = vrot.lane.b32.xlu1 %v2059_v21, %s2060_s25 }
 0x256   : > { %1187 = vrot.lane.b32.xlu1 %v2265_v37, %s2056_s18 }
 0x25a   : > { %1191 = vrot.lane.b32.xlu1 %v2265_v37, %s2056_s18 }
 0x25e   : > { %1139 = vrot.lane.b32.xlu1 %v2290_v52, %s2054_s17 }
 0x262   : > { %1143 = vrot.lane.b32.xlu1 %v2290_v52, %s2054_s17 }
 0x2c6   : > { %v866_v40 = vpop.xlane.xlu0 %865 }
 0x2c7   : > { %v871_v42 = vmul.f32 0.00390625, %v866_v40 }
 0x2c9   : > { %v873_v43 = vsub.f32 %v855_v31, %v871_v42  ;;  %v874_v45 = vsub.f32 %v857_v33, %v871_v42 }
 0x2ca   : > { %v869_v47 = vpop.xlane.xlu1 %868 }
 0x2cb   : > { %v872_v50 = vmul.f32 0.00390625, %v869_v47  ;;  %v877_v51 = vmul.f32 %v873_v43, %v873_v43  ;;  %v878_v54 = vmul.f32 %v874_v45, %v874_v45 }
 0x2cd   : > { %v875_v48 = vsub.f32 %v859_v7, %v872_v50  ;;  %v876_v55 = vsub.f32 %v861_v36, %v872_v50  ;;  %v881_v57 = vadd.f32 %v878_v54, %v877_v51 }
 0x2cf   : > { %882 = vadd.xlane.f32.xlu0 %v881_v57  ;;  %v879_v58 = vmul.f32 %v875_v48, %v875_v48  ;;  %v880_v37 = vmul.f32 %v876_v55, %v876_v55 }
 0x2d1   : > { %v884_v59 = vadd.f32 %v880_v37, %v879_v58 }
 0x2d3   : > { %885 = vadd.xlane.f32.xlu0 %v884_v59 }
 0x2e9   : > { %1229 = vrot.lane.b32.xlu0 %v2059_v21, %s2060_s25 }
 0x358   : > { %v883_v52 = vpop.xlane.xlu0 %882 }
 0x359   : > { %v887_v61 = vmul.f32 0.00390625, %v883_v52 }
 0x35b   : > { %v889_v63 = vadd.f32 1e-05, %v887_v61 }
 0x35c   : > { %v886_v6 = vpop.xlane.xlu0 %885 }
 0x35d   : > { %1914 = vrsqrt.f32 %v889_v63  ;;  %v888_v1 = vmul.f32 0.00390625, %v886_v6 }
 0x35f   : > { %v890_v8 = vadd.f32 1e-05, %v888_v1 }
 0x361   : > { %1916 = vrsqrt.f32 %v890_v8 }
 0x36a   : > { %v1915_v2 = vpop.eup %1914 }
 0x36b   : > { %v893_v3 = vmul.f32 %v1915_v2, %v873_v43  ;;  %v894_v4 = vmul.f32 %v1915_v2, %v874_v45  ;;  %v1913_v2 = vld [vmem:[#allocation7 + $0x14] ss:$8 sps:$4 sm:$0xff]  }
 0x36c   : > { %1726 = vmatprep.mubr.msk.bf16.mxu1 %vm337_vm12, %v1913_v2 }
 0x36d   : > { %v2458_v11 = vmax.f32 %v893_v3, 0.0  ;;  %v2460_v12 = vmax.f32 %v894_v4, 0.0 }
 0x36e   : > { %v1917_v13 = vpop.eup %1916 }
 0x36f   : > { %v1783_v14 = vpack.c.bf16 %v2460_v12, %v2458_v11  ;;  %v1771_v21 = vpack.c.bf16 %v2458_v11, %v2052_v9  ;;  %v1051_v17 = vmul.f32 %v2288_v49, %v2460_v12  ;;  %v1163_v20 = vmul.f32 %v2255_v30, %v2458_v11 }
 0x370   : > { %v1164_v15 = vmul.f32 %v2460_v12, %v2259_v32  ;;  %v895_v18 = vmul.f32 %v1917_v13, %v875_v48  ;;  %v896_v22 = vmul.f32 %v1917_v13, %v876_v55  ;;  %v1003_v23 = vmul.f32 %v2312_v0, %v2460_v12 }
 0x371   : > { %1227 = vrot.lane.b32.xlu1 %v1783_v14, %s2060_s25  ;;  %975 = vrot.lane.b32.xlu0 %v1771_v21, %s2061_s26  ;;  %v1780_v24 = vpack.c.bf16 %v1051_v17, %v1051_v17  ;;  %v1115_v19 = vmul.f32 %v2267_v39, %v2458_v11  ;;  %v1116_v26 = vmul.f32 %v2460_v12, %v2275_v44  ;;  %v1230_v14 = vpop.permute.xlu0 %1229 }
 0x372   : > { %v1789_v16 = vpack.c.bf16 %v1164_v15, %v1163_v20  ;;  %v2482_v27 = vmax.f32 %v895_v18, 0.0  ;;  %v2484_v29 = vmax.f32 %v896_v22, 0.0  ;;  %v1776_v5 = vpack.c.bf16 %v1003_v23, %v1003_v23 }
 0x373   : > { %v1785_v31 = vpack.c.bf16 %v1116_v26, %v1115_v19  ;;  %v1050_v33 = vmul.f32 %v2458_v11, %v2297_v56  ;;  %v1002_v36 = vmul.f32 %v2458_v11, %v2320_v10  ;;  %v1772_v43 = vpack.c.bf16 %v2460_v12, %v2460_v12 }
 0x374   : > { %v1784_v7 = vpack.c.bf16 %v2484_v29, %v2482_v27  ;;  %v1805_v38 = vpack.c.bf16 %v2484_v29, %v2460_v12  ;;  %v1804_v40 = vpack.c.bf16 %v2482_v27, %v2458_v11  ;;  %v913_v45 = vmul.f32 %v2339_v28, %v2460_v12 }
 0x375   : > { %1073 = vrot.lane.b32.xlu1 %v1780_v24, %s2055_s8  ;;  %1185 = vrot.lane.b32.xlu0 %v1789_v16, %s2056_s18  ;;  %v1779_v34 = vpack.c.bf16 %v1050_v33, %v2307_v60  ;;  %v1775_v42 = vpack.c.bf16 %v1002_v36, %v2333_v25  ;;  %v1774_v47 = vpack.c.bf16 %v2484_v29, %v2484_v29  ;;  %v1236_v22 = vrot.slane %v1230_v14, 4 }
 0x376   : > { %v1773_v50 = vpack.c.bf16 %v2482_v27, %v2052_v9  ;;  %v1166_v51 = vmul.f32 %v2255_v30, %v2482_v27  ;;  %v1167_v54 = vmul.f32 %v2484_v29, %v2259_v32  ;;  %v1768_v48 = vpack.c.bf16 %v913_v45, %v913_v45 }
 0x377   : > { %v1054_v57 = vmul.f32 %v2288_v49, %v2484_v29  ;;  %v1118_v58 = vmul.f32 %v2267_v39, %v2482_v27  ;;  %v1119_v9 = vmul.f32 %v2484_v29, %v2275_v44  ;;  %v1006_v37 = vmul.f32 %v2312_v0, %v2484_v29 }
 0x378   : > { %v1791_v55 = vpack.c.bf16 %v1167_v54, %v1166_v51  ;;  %v912_v59 = vmul.f32 %v2458_v11, %v2348_v35  ;;  %v1053_v44 = vmul.f32 %v2482_v27, %v2297_v56  ;;  %v916_v0 = vmul.f32 %v2339_v28, %v2484_v29 }
 0x379   : > { %1025 = vrot.lane.b32.xlu1 %v1776_v5, %s2053_s15  ;;  %1137 = vrot.lane.b32.xlu0 %v1785_v31, %s2054_s17  ;;  %v1782_v30 = vpack.c.bf16 %v1054_v57, %v1054_v57  ;;  %v1787_v32 = vpack.c.bf16 %v1119_v9, %v1118_v58  ;;  %v1778_v39 = vpack.c.bf16 %v1006_v37, %v1006_v37 }
 0x37a   : > { %v1767_v49 = vpack.c.bf16 %v912_v59, %v2357_v41  ;;  %v1781_v52 = vpack.c.bf16 %v1053_v44, %v2307_v60  ;;  %v1005_v61 = vmul.f32 %v2482_v27, %v2320_v10  ;;  %v1770_v63 = vpack.c.bf16 %v916_v0, %v916_v0 }
 0x37b   : > { %v1253_v6 = vmul.f32 %v2364_v46, %v2458_v11  ;;  %v1254_v60 = vmul.f32 %v2460_v12, %v2372_v53  ;;  %v915_v10 = vmul.f32 %v2482_v27, %v2348_v35  ;;  %v1256_v1 = vmul.f32 %v2364_v46, %v2482_v27  ;;  %v1234_v35 = vpop.permute.xlu1 %1233 }
 0x37c   : > { %v1777_v56 = vpack.c.bf16 %v1005_v61, %v2333_v25  ;;  %v1257_v8 = vmul.f32 %v2484_v29, %v2372_v53  ;;  %v1238_v16 = vrot.slane %v1234_v35, 4 }
 0x37d   : > { %1071 = vrot.lane.b32.xlu0 %v1779_v34, %s2055_s8  ;;  %1231 = vrot.lane.b32.xlu1 %v1784_v7, %s2060_s25  ;;  %v1797_v28 = vpack.c.bf16 %v1254_v60, %v1253_v6  ;;  %v1769_v25 = vpack.c.bf16 %v915_v10, %v2357_v41 }
 0x37e   : > { %v1799_v3 = vpack.c.bf16 %v1257_v8, %v1256_v1 }
 0x381   : > { %1023 = vrot.lane.b32.xlu0 %v1775_v42, %s2053_s15  ;;  %977 = vrot.lane.b32.xlu1 %v1772_v43, %s2061_s26 }
 0x385   : > { %981 = vrot.lane.b32.xlu1 %v1774_v47, %s2061_s26  ;;  %979 = vrot.lane.b32.xlu0 %v1773_v50, %s2061_s26 }
 0x389   : > { %935 = vrot.lane.b32.xlu1 %v1768_v48, %s2058_s20  ;;  %1189 = vrot.lane.b32.xlu0 %v1791_v55, %s2056_s18 }
 0x38d   : > { %1077 = vrot.lane.b32.xlu1 %v1782_v30, %s2055_s8  ;;  %1141 = vrot.lane.b32.xlu0 %v1787_v32, %s2054_s17 }
 0x391   : > { %1029 = vrot.lane.b32.xlu1 %v1778_v39, %s2053_s15  ;;  %933 = vrot.lane.b32.xlu0 %v1767_v49, %s2058_s20 }
 0x395   : > { %1277 = vrot.lane.b32.xlu1 %v2385_v62, %s2057_s19  ;;  %1075 = vrot.lane.b32.xlu0 %v1781_v52, %s2055_s8 }
 0x399   : > { %939 = vrot.lane.b32.xlu1 %v1770_v63, %s2058_s20  ;;  %1027 = vrot.lane.b32.xlu0 %v1777_v56, %s2053_s15 }
 0x39d   : > { %1281 = vrot.lane.b32.xlu1 %v2385_v62, %s2057_s19  ;;  %1275 = vrot.lane.b32.xlu0 %v1797_v28, %s2057_s19  ;;  %v1188_v62 = vpop.permute.xlu1 %1187 }
 0x39e   : > { %v1194_v50 = vrot.slane %v1188_v62, 4 }
 0x3a1   : > { %937 = vrot.lane.b32.xlu0 %v1769_v25, %s2058_s20  ;;  %v1192_v4 = vpop.permute.xlu1 %1191 }
 0x3a2   : > { %v1196_v48 = vrot.slane %v1192_v4, 4 }
 0x3a5   : > { %1279 = vrot.lane.b32.xlu0 %v1799_v3, %s2057_s19  ;;  %v1140_v13 = vpop.permute.xlu1 %1139 }
 0x3a6   : > { %v1146_v9 = vrot.slane %v1140_v13, 4 }
 0x3a9   : > { %v1144_v41 = vpop.permute.xlu1 %1143 }
 0x3aa   : > { %v1148_v32 = vrot.slane %v1144_v41, 4 }
 0x3e3   : > { %v2565_v21 = vpop.permute.xlu0 %975  ;;  %v1228_v46 = vpop.permute.xlu1 %1227 }
 0x3e4   : > { %v1235_v18 = vrot.slane %v1228_v46, 4 }
 0x3e6   : > { %v1239_v26 = vsel %vm292_vm8, %v1235_v18, %v1236_v22 }
 0x3e7   : > { %v1186_v17 = vpop.permute.xlu0 %1185  ;;  %v1074_v20 = vpop.permute.xlu1 %1073  ;;  %v1240_v34 = vsel %vm632_vm9, %v1228_v46, %v1239_v26 }
 0x3e8   : > { %v1193_v47 = vrot.slane %v1186_v17, 4  ;;  %v1080_v8 = vrot.slane %v1074_v20, 4 }
 0x3ea   : > { %v1197_v55 = vsel %vm292_vm8, %v1193_v47, %v1194_v50 }
 0x3eb   : > { %v1138_v53 = vpop.permute.xlu0 %1137  ;;  %v2567_v15 = vpop.permute.xlu1 %1025  ;;  %v1198_v37 = vsel %vm357_vm7, %v1186_v17, %v1197_v55  ;;  %v983_v17 = vrot.slane %v2565_v21, 4 }
 0x3ec   : > { %v1145_v57 = vrot.slane %v1138_v53, 4  ;;  %v1032_v46 = vrot.slane %v2567_v15, 4 }
 0x3ee   : > { %v1149_v44 = vsel %vm292_vm8, %v1145_v57, %v1146_v9 }
 0x3ef   : > { %v1072_v23 = vpop.permute.xlu0 %1071  ;;  %v1232_v24 = vpop.permute.xlu1 %1231  ;;  %v1150_v56 = vsel %vm415_vm6, %v1138_v53, %v1149_v44 }
 0x3f0   : > { %v1237_v19 = vrot.slane %v1232_v24, 4  ;;  %v1079_v10 = vrot.slane %v1072_v23, 4 }
 0x3f2   : > { %v1241_v5 = vsel %vm292_vm8, %v1237_v19, %v1238_v16  ;;  %v1083_v4 = vsel %vm292_vm8, %v1079_v10, %v1080_v8 }
 0x3f3   : > { %v2571_v31 = vpop.permute.xlu0 %1023  ;;  %v2573_v33 = vpop.permute.xlu1 %977  ;;  %v1242_v7 = vsel %vm632_vm9, %v1232_v24, %v1241_v5  ;;  %v1084_v18 = vsel %vm455_vm5, %v1072_v23, %v1083_v4 }
 0x3f4   : > { %v1723_v36 = vcombine.high %v1240_v34, %v1242_v7  ;;  %v1722_v42 = vcombine.low %v1240_v34, %v1242_v7  ;;  %v1031_v2 = vrot.slane %v2571_v31, 4  ;;  %v984_v20 = vrot.slane %v2573_v33, 4 }
 0x3f6   : > { %1418 = vmatprep.subr.bf16.mxu1 %v1723_v36  ;;  %v1035_v22 = vsel %vm292_vm8, %v1031_v2, %v1032_v46  ;;  %v987_v26 = vsel %vm292_vm8, %v983_v17, %v984_v20 }
 0x3f7   : > { %v2577_v43 = vpop.permute.xlu0 %979  ;;  %1419 = vmatpush1.bf16.msra.mxu1 %v1722_v42  ;;  %v982_v45 = vpop.permute.xlu1 %981  ;;  %v1036_v33 = vsel %vm397_vm4, %v2571_v31, %v1035_v22  ;;  %v988_v42 = vsel %vm337_vm12, %v2565_v21, %v987_v26  ;;  %v1494_v26 = vld [vmem:[%s2201_s24 + $0x8] sm:$0xff] }
 0x3f8   : > { %v985_v3 = vrot.slane %v2577_v43, 4  ;;  %v986_v35 = vrot.slane %v982_v45, 4 }
 0x3fa   : > { %v989_v24 = vsel %vm292_vm8, %v985_v3, %v986_v35 }
 0x3fb   : > { %v1190_v51 = vpop.permute.xlu0 %1189  ;;  %v2579_v54 = vpop.permute.xlu1 %935  ;;  %v990_v11 = vsel %vm337_vm12, %v2577_v43, %v989_v24 }
 0x3fc   : > { %v1195_v58 = vrot.slane %v1190_v51, 4  ;;  %v942_v45 = vrot.slane %v2579_v54, 4  ;;  %v1711_v47 = vcombine.high %v988_v42, %v990_v11  ;;  %v1710_v43 = vcombine.low %v988_v42, %v990_v11  ;;  %v1495_v11 = vld [vmem:[%s2201_s24 + $0x10] sm:$0xff] }
 0x3fe   : > { %v1199_v30 = vsel %vm292_vm8, %v1195_v58, %v1196_v48 }
 0x3ff   : > { %v1200_v59 = vsel %vm357_vm7, %v1190_v51, %v1199_v30  ;;  %v1142_v39 = vpop.permute.xlu0 %1141  ;;  %v1078_v49 = vpop.permute.xlu1 %1077 }
 0x400   : > { %v1720_v52 = vcombine.low %v1198_v37, %v1200_v59  ;;  %v1721_v0 = vcombine.high %v1198_v37, %v1200_v59  ;;  %v1147_v61 = vrot.slane %v1142_v39, 4  ;;  %v1082_v13 = vrot.slane %v1078_v49, 4 }
 0x402   : > { %v1151_v63 = vsel %vm292_vm8, %v1147_v61, %v1148_v32  ;;  %1420 = vmatprep.subr.bf16.mxu1 %v1721_v0 }
 0x403   : > { %v1152_v6 = vsel %vm415_vm6, %v1142_v39, %v1151_v63  ;;  %v934_v60 = vpop.permute.xlu0 %933  ;;  %1421 = vmatpush1.bf16.msra.mxu1 %v1720_v52  ;;  %v1030_v28 = vpop.permute.xlu1 %1029 }
 0x404   : > { %v1718_v25 = vcombine.low %v1150_v56, %v1152_v6  ;;  %v1719_v1 = vcombine.high %v1150_v56, %v1152_v6  ;;  %v1034_v12 = vrot.slane %v1030_v28, 4  ;;  %v941_v27 = vrot.slane %v934_v60, 4  ;;  %v1911_v56 = vld [vmem:[#allocation7 + $0x10] ss:$8 sps:$4 sm:$0xff]  }
 0x406   : > { %1422 = vmatprep.subr.bf16.mxu1 %v1719_v1  ;;  %v945_v31 = vsel %vm292_vm8, %v941_v27, %v942_v45  ;;  %v1496_v27 = vld [vmem:[%s2201_s24 + $0x18] sm:$0xff] }
 0x407   : > { %v1076_v62 = vpop.permute.xlu0 %1075  ;;  %1423 = vmatpush1.bf16.msra.mxu1 %v1718_v25  ;;  %v1278_v41 = vpop.permute.xlu1 %1277  ;;  %v946_v30 = vsel %vm294_vm11, %v934_v60, %v945_v31 }
 0x408   : > { %v1081_v14 = vrot.slane %v1076_v62, 4  ;;  %1424 = vmatprep.subr.bf16.mxu1 %v1805_v38  ;;  %v1284_v58 = vrot.slane %v1278_v41, 4 }
 0x40a   : > { %v1085_v53 = vsel %vm292_vm8, %v1081_v14, %v1082_v13 }
 0x40b   : > { %v1086_v16 = vsel %vm455_vm5, %v1076_v62, %v1085_v53  ;;  %v1028_v19 = vpop.permute.xlu0 %1027  ;;  %1425 = vmatpush1.bf16.msra.mxu1 %v1804_v40  ;;  %v940_v23 = vpop.permute.xlu1 %939 }
 0x40c   : > { %v1714_v29 = vcombine.low %v1084_v18, %v1086_v16  ;;  %v1715_v38 = vcombine.high %v1084_v18, %v1086_v16  ;;  %v1033_v15 = vrot.slane %v1028_v19, 4  ;;  %v944_v51 = vrot.slane %v940_v23, 4 }
 0x40e   : > { %v1037_v5 = vsel %vm292_vm8, %v1033_v15, %v1034_v12  ;;  %1426 = vmatprep.subr.bf16.mxu1 %v1715_v38  ;;  %v1493_v15 = vld [vmem:[%s2201_s24] sm:$0xff]  ;;  %s1982_s24 = scalar_lea.vmem %s1981_s23, 1024 }
 0x40f   : > { %v1038_v34 = vsel %vm397_vm4, %v1028_v19, %v1037_v5  ;;  %v1276_v7 = vpop.permute.xlu0 %1275  ;;  %1427 = vmatpush1.bf16.msra.mxu1 %v1714_v29  ;;  %v1282_v55 = vpop.permute.xlu1 %1281  ;;  %p1984_p2 = scmp.lt.s32.totalorder %s1982_s24, %s1976_s7 }
 0x410   : > { %v1712_v40 = vcombine.low %v1036_v33, %v1038_v34  ;;  %v1713_v36 = vcombine.high %v1036_v33, %v1038_v34  ;;  %v1283_v48 = vrot.slane %v1276_v7, 4  ;;  %v1286_v21 = vrot.slane %v1282_v55, 4 }
 0x411   : > { %p1985_p13 = por %p1984_p2, %p1983_p10 }
 0x412   : > { %1428 = vmatprep.subr.bf16.mxu1 %v1713_v36  ;;  %v1287_v37 = vsel %vm292_vm8, %v1283_v48, %v1284_v58 }
 0x413   : > { %v938_v50 = vpop.permute.xlu0 %937  ;;  %1429 = vmatpush1.bf16.msra.mxu1 %v1712_v40  ;;  %v1288_v52 = vsel %vm253_vm10, %v1276_v7, %v1287_v37  ;;  %p1986_p0 = pnand %p1985_p13, %p1979_p12 }
 0x414   : > { %v943_v57 = vrot.slane %v938_v50, 4  ;;  %1430 = vmatprep.subr.bf16.mxu1 %v1711_v47 }
 0x416   : > { %v947_v9 = vsel %vm292_vm8, %v943_v57, %v944_v51 }
 0x417   : > { %v948_v54 = vsel %vm294_vm11, %v938_v50, %v947_v9  ;;  %v1280_v32 = vpop.permute.xlu0 %1279  ;;  %1431 = vmatpush1.bf16.msra.mxu1 %v1710_v43 }
 0x418   : > { %v1708_v59 = vcombine.low %v946_v30, %v948_v54  ;;  %v1709_v39 = vcombine.high %v946_v30, %v948_v54  ;;  %v1285_v49 = vrot.slane %v1280_v32, 4 }
 0x41a   : > { %v1289_v44 = vsel %vm292_vm8, %v1285_v49, %v1286_v21  ;;  %1432 = vmatprep.subr.bf16.mxu1 %v1709_v39 }
 0x41b   : > { %v1290_v0 = vsel %vm253_vm10, %v1280_v32, %v1289_v44  ;;  %1433 = vmatpush1.bf16.msra.mxu1 %v1708_v59 }
 0x41c   : > { %v1724_v61 = vcombine.low %v1288_v52, %v1290_v0  ;;  %v1725_v63 = vcombine.high %v1288_v52, %v1290_v0 }
 0x41e   : > { %1448 = vmatprep.subr.bf16.mxu1 %v1725_v63 }
 0x41f   : > { %1449 = vmatpush2.bf16.msra.mxu1 %v1724_v61 }
 0x422   : > { %1451 = vmatmul.mubr.bf16.vlgmr.msra.gmra.mxu1 %v1911_v56 }
 0x4e2   : > { %v1452_v6 = vpop.f32.mrf.mxu1 }
 0x4e4   : > { %v1454_v60 = vpop.f32.mrf.mxu1 }
 0x4e5   : > { %v1461_v28 = vadd.f32 %v1454_v60, %v1452_v6 }
 0x4e6   : > { %v1456_v10 = vpop.f32.mrf.mxu1 }
 0x4e7   : > { %1462 = vadd.xlane.f32.xlu0 %v1461_v28 }
 0x4e8   : > { %v1458_v25 = vpop.f32.mrf.mxu1 }
 0x4e9   : > { %v1464_v1 = vadd.f32 %v1458_v25, %v1456_v10 }
 0x4eb   : > { %1465 = vadd.xlane.f32.xlu1 %v1464_v1 }
 0x570   : > { %v1463_v8 = vpop.xlane.xlu0 %1462 }
 0x571   : > { %v1467_v2 = vmul.f32 0.00390625, %v1463_v8 }
 0x573   : > { %v1469_v3 = vsub.f32 %v1452_v6, %v1467_v2  ;;  %v1470_v35 = vsub.f32 %v1454_v60, %v1467_v2 }
 0x574   : > { %v1466_v62 = vpop.xlane.xlu1 %1465 }
 0x575   : > { %v1468_v4 = vmul.f32 0.00390625, %v1466_v62  ;;  %v1473_v13 = vmul.f32 %v1469_v3, %v1469_v3  ;;  %v1474_v14 = vmul.f32 %v1470_v35, %v1470_v35 }
 0x577   : > { %v1471_v41 = vsub.f32 %v1456_v10, %v1468_v4  ;;  %v1472_v46 = vsub.f32 %v1458_v25, %v1468_v4  ;;  %v1477_v17 = vadd.f32 %v1474_v14, %v1473_v13 }
 0x579   : > { %1478 = vadd.xlane.f32.xlu0 %v1477_v17  ;;  %v1475_v20 = vmul.f32 %v1471_v41, %v1471_v41  ;;  %v1476_v53 = vmul.f32 %v1472_v46, %v1472_v46 }
 0x57b   : > { %v1480_v18 = vadd.f32 %v1476_v53, %v1475_v20 }
 0x57d   : > { %1481 = vadd.xlane.f32.xlu0 %v1480_v18 }
 0x602   : > { %v1479_v22 = vpop.xlane.xlu0 %1478 }
 0x603   : > { %v1483_v24 = vmul.f32 0.00390625, %v1479_v22 }
 0x605   : > { %v1485_v16 = vadd.f32 1e-05, %v1483_v24 }
 0x606   : > { %v1482_v19 = vpop.xlane.xlu0 %1481 }
 0x607   : > { %1918 = vrsqrt.f32 %v1485_v16  ;;  %v1484_v12 = vmul.f32 0.00390625, %v1482_v19 }
 0x609   : > { %v1486_v29 = vadd.f32 1e-05, %v1484_v12 }
 0x60b   : > { %1920 = vrsqrt.f32 %v1486_v29 }
 0x614   : > { %v1919_v38 = vpop.eup %1918 }
 0x615   : > { %v1489_v5 = vmul.f32 %v1919_v38, %v1469_v3  ;;  %v1490_v23 = vmul.f32 %v1919_v38, %v1470_v35 }
 0x617   : > { %v1497_v33 = vadd.f32 %v1493_v15, %v1489_v5  ;;  %v1498_v34 = vadd.f32 %v1494_v26, %v1490_v23 }
 0x618   : > { %v1921_v7 = vpop.eup %1920 }
 0x619   : > { %1501 = vst [vmem:[%s176_s28] sm:$0xff] %v1497_v33  ;;  %1502 = vst [vmem:[%s176_s28 + $0x8] sm:$0xff] %v1498_v34  ;;  %v1491_v40 = vmul.f32 %v1921_v7, %v1471_v41  ;;  %v1492_v36 = vmul.f32 %v1921_v7, %v1472_v46 }
 0x61b   : > { %v1499_v42 = vadd.f32 %v1495_v11, %v1491_v40  ;;  %v1500_v45 = vadd.f32 %v1496_v27, %v1492_v36 }
 0x61d   : > { %1503 = vst [vmem:[%s176_s28 + $0x10] sm:$0xff] %v1499_v42  ;;  %1504 = vst [vmem:[%s176_s28 + $0x18] sm:$0xff] %v1500_v45 }
 0x61e   : > { %1989 = shalt.err (!%p1986_p0)
}
 0x61f   : > { %s1990_s15 = scalar_lea.hbm %s2634_s6, 512  ;;  %s1994_s18 = scalar_lea.hbm %s2682_s2, 1024 }
 0x620   : > { %p1991_p5 = scmp.ne.s32.totalorder %s2634_s6, %s1990_s15  ;;  %p1995_p4 = scmp.lt.s32.totalorder %s2634_s6, %s2682_s2 }
 0x621   : > { %p1996_p6 = scmp.lt.s32.totalorder %s1994_s18, %s1990_s15 }
 0x622   : > { %p1992_p9 = pnand %p1991_p5, %p2698_p11 }
 0x623   : > { %p1997_p8 = por %p1996_p6, %p1995_p4 }
 0x624   : > { %p1993_p1 = pneg %p1992_p9 }
 0x626   : > { %p1998_p3 = pnand %p1997_p8, %p1993_p1 }
 0x628   : > { %2001 = shalt.err (!%p1998_p3)
}
 0x629   : > { %s2063_s25 = smov 256  }
 0x62a   : > { %1812 = dma.vmem_to_hbm [thread:$0]  (%p2698_p11), %s2636_s3, 512, %s2634_s6, %s1506_s13, %s2063_s25, %s2063_s25, %s2061_s26  }
 0x62b PF: > { %s1534_s27 = sand.u32 1, %s2032_s9   ;;  %p2699_p7 = scmp.ne.s32.totalorder %s2688_s16, 0 }
 0x62c   : > { %p2700_p12 = scmp.ge.s32.totalorder %s2044_s12, 2  ;;  %s1535_s28 = scalar_lea.sflag [#allocation6], %s1534_s27 }
 0x62e   : > { %p1823_p10 = pnand %p2700_p12, %p2699_p7 }
 0x630   : > { %p1824_p2 = pneg %p1823_p10 }
 0x632   : > { %2027 = dma.done.wait (%p1824_p2), %s1535_s28, 512  }
 0x633   : > { %2029 = vsyncadd (%p1824_p2), %s1535_s28, 4294966784  ;;  %p16_p13 = scmp.ge.s32.totalorder %s2133_s21, 4   ;;  %s2701_s9 = smov %s2036_s10 }
 0x634   : > { %s2702_s10 = smov %s2040_s11  ;;  %s2703_s11 = smov %s2150_s29 }
 0x635   : > { %s2704_s12 = smov %s2133_s21  ;;  %18 = sbr.rel (!%p16_p13) target bundleno = 6 (0x6), region = 78 }
 0x63a   :  { %1540 = vsyncpa [#allocation5], 1 }
 0x63b   :  { %1542 = vsyncpa [#allocation5 + $0x1], 1 }
 0x63c   :  { %1543 = vsyncpa [#allocation8], 1 }
 0x63d   :  { %1544 = vsyncpa [#allocation6], 1 }
 0x63e   :  { %1546 = vsyncpa [#allocation6 + $0x1], 1 }

</bundles_post_ra>
